<compile_context>
chip_gen: v7x
topology: tpu7x:2x2x1
jax: 0.10.0
libtpu: 0.0.40
codegen_flags: <defaults>
</compile_context>

<pallas_src>
import functools
import math

import jax
import jax.numpy as jnp
from jax.experimental import pallas as pl
from jax.experimental.pallas import tpu as pltpu

_NEG_INF = -1e20


# ---------------------------------------------------------------------------
# Feature probe: un-blocked VMEM-resident inputs alongside a grid.  The
# try/except is confined to this tiny probe so compile/run errors of the real
# kernel are never swallowed (review feedback on the old broad fallback).
# ---------------------------------------------------------------------------
@functools.lru_cache(maxsize=1)
def _whole_vmem_inputs_supported():
    def probe_kernel(w_ref, x_ref, o_ref):
        o_ref[...] = x_ref[...] + w_ref[...]

    try:
        fn = pl.pallas_call(
            probe_kernel,
            out_shape=jax.ShapeDtypeStruct((2, 8, 128), jnp.float32),
            grid=(2,),
            in_specs=[
                pl.BlockSpec(memory_space=pltpu.MemorySpace.VMEM),   # "weight"
                pl.BlockSpec((1, 8, 128), lambda i: (i, 0, 0)),      # data
            ],
            out_specs=pl.BlockSpec((1, 8, 128), lambda i: (i, 0, 0)),
        )
        jax.block_until_ready(
            fn(jnp.zeros((8, 128), jnp.float32),
               jnp.zeros((2, 8, 128), jnp.float32)))
        return True
    except Exception:   # probe only; the real kernel is never wrapped
        return False


def _vmem_limit_bytes():
    """Generation-aware VMEM limit (no hard-coded 48 MiB)."""
    cap = None
    if hasattr(pltpu, "get_tpu_info"):
        try:
            cap = getattr(pltpu.get_tpu_info(), "vmem_capacity_bytes", None)
        except Exception:   # info query only
            cap = None
    if not cap:
        cap = 64 * 1024 * 1024        # conservative: v7x per-TensorCore VMEM
    return min(int(cap * 0.85), 110 * 1024 * 1024)


def _const_index_map(ndim):
    if ndim == 1:
        return lambda b: (0,)
    if ndim == 2:
        return lambda b: (0, 0)
    return lambda b: (0, 0, 0)


def make_decoder_layer(n_heads, dim, ffn_dim, T, S, *, eps=1e-5,
                       compute_dtype=jnp.bfloat16, block_batch=1):
    assert dim % n_heads == 0
    dph = dim // n_heads
    inv_scale = 1.0 / math.sqrt(dph)
    cdt = jnp.dtype(compute_dtype)
    f32 = jnp.float32
    BB = block_batch
    N = BB * T
    approx_recip = (cdt == jnp.dtype(jnp.bfloat16))
    # Alignment note (perf, not correctness): for lane-dense loads/stores at
    # realistic sizes pick dim % 128 == 0, T/S multiples of 8 (f32) or 16
    # (bf16), and ideally dph % 128 == 0 so head lane-slices are whole vregs.

    def layernorm(v, g, b):
        mu = jnp.mean(v, axis=-1, keepdims=True)
        c = v - mu
        var = jnp.mean(c * c, axis=-1, keepdims=True)
        return c * jax.lax.rsqrt(var + eps) * g + b

    # ------------------------- the fused kernel ----------------------------
    def kernel(x_ref, enc_ref, emadd_ref, causal_ref,
               wqkv_sa_ref, bqkv_sa_ref, wo_sa_ref, bo_sa_ref,
               wq_ea_ref, bq_ea_ref, wkv_ea_ref, bkv_ea_ref,
               wo_ea_ref, bo_ea_ref,
               lng_ref, lnb_ref, w1_ref, b1_ref, w2_ref, b2_ref,
               o_ref):
        x2 = x_ref[...].reshape(N, dim)                   # f32 residual stream
        enc2 = enc_ref[...].reshape(BB * S, dim)          # f32
        causal_add = causal_ref[...][None, :, :]          # (1, T, T) additive
        enc_add = emadd_ref[...]                          # (BB, 1, S) additive
        lng = lng_ref[...]
        lnb = lnb_ref[...]

        def attend(q_proj, kv_proj, k_off, v_off, kv_seq, wo_ref_, b_o,
                   mask_add):
            # q_proj: (N, *) f32, per-head q at lanes [h*dph, (h+1)*dph)
            #         (already scaled by 1/sqrt(dph) via host-folded weights).
            # kv_proj: (BB*kv_seq, *) f32, k at k_off + ..., v at v_off + ...
            out = None
            for h in range(n_heads):                      # unrolled head loop
                lo = h * dph
                qh = q_proj[:, lo:lo + dph].reshape(BB, T, dph).astype(cdt)
                kh = kv_proj[:, k_off + lo:k_off + lo + dph] \
                    .reshape(BB, kv_seq, dph).astype(cdt)
                vh = kv_proj[:, v_off + lo:v_off + lo + dph] \
                    .reshape(BB, kv_seq, dph).astype(cdt)
                s = jnp.einsum('bqe,bke->bqk', qh, kh,
                               preferred_element_type=jnp.float32)
                s = s + mask_add                          # additive -1e20 mask
                s = s - jnp.max(s, axis=-1, keepdims=True)
                p = jnp.exp(s)
                denom = jnp.sum(p, axis=-1, keepdims=True)
                a = jnp.einsum('bqk,bke->bqe', p.astype(cdt), vh,
                               preferred_element_type=jnp.float32)
                # deferred softmax normalisation on the small (BB,T,dph) tensor
                a = a * pl.reciprocal(denom, approx=approx_recip)
                part = jnp.dot(a.reshape(N, dph).astype(cdt), wo_ref_[h],
                               preferred_element_type=jnp.float32)
                out = part if out is None else out + part
            return out + b_o

        # ---- self attention + residual + norm1 ----
        qkv = jnp.dot(x2.astype(cdt), wqkv_sa_ref[...],
                      preferred_element_type=jnp.float32) + bqkv_sa_ref[...]
        h_sa = attend(qkv, qkv, dim, 2 * dim, T, wo_sa_ref, bo_sa_ref[...],
                      causal_add)
        h1 = layernorm(h_sa + x2, lng[0:1, :], lnb[0:1, :])

        # ---- encoder attention + residual + norm2 ----
        qc = jnp.dot(h1.astype(cdt), wq_ea_ref[...],
                     preferred_element_type=jnp.float32) + bq_ea_ref[...]
        kvc = jnp.dot(enc2.astype(cdt), wkv_ea_ref[...],
                      preferred_element_type=jnp.float32) + bkv_ea_ref[...]
        h_ea = attend(qc, kvc, 0, dim, S, wo_ea_ref, bo_ea_ref[...], enc_add)
        h2 = layernorm(h1 + h_ea, lng[1:2, :], lnb[1:2, :])

        # ---- FFN + residual + norm3 ----
        ff = jnp.dot(h2.astype(cdt), w1_ref[...],
                     preferred_element_type=jnp.float32) + b1_ref[...]
        ff = jnp.maximum(ff, jnp.float32(0.0))
        h3 = jnp.dot(ff.astype(cdt), w2_ref[...],
                     preferred_element_type=jnp.float32) + b2_ref[...]
        h3 = layernorm(h2 + h3, lng[2:3, :], lnb[2:3, :])

        o_ref[...] = h3.reshape(BB, T, dim).astype(o_ref.dtype)

    whole_vmem_ok = _whole_vmem_inputs_supported()

    def const_spec(shape):
        if whole_vmem_ok:
            # Un-blocked, VMEM-resident for the whole kernel: single copy,
            # no double buffering (weights never change across the grid).
            return pl.BlockSpec(memory_space=pltpu.MemorySpace.VMEM)
        # Fallback: full-shape block with a constant index map; the pipeline
        # skips redundant DMAs for the unchanged block index (costs a second
        # VMEM buffer, but always supported).
        return pl.BlockSpec(shape, _const_index_map(len(shape)))

    # ------------------------- wrapper / pallas_call ------------------------
    def call(x, encoder_output, encoder_mask, params):
        B = x.shape[0]
        assert B % BB == 0, "batch must be divisible by block_batch"
        # v7x note: keep grid extent B // BB >= 2 so the "parallel" batch axis
        # can actually split across both TensorCores.
        wsa, bsa, wea, bea, lng, lnb, w1, b1, w2, b2 = params

        # Host-side weight pre-layout:
        #  * 1/sqrt(dph) folded into the q projection weights/bias,
        #  * fused QKV (self-attn) / fused KV (cross-attn) matmuls,
        #  * out-projection reshaped to (H, dph, D) so the per-head merge is a
        #    plain first-axis index (no transposes anywhere in the kernel).
        wqkv_sa = jnp.concatenate([wsa[0] * inv_scale, wsa[1], wsa[2]], axis=1)
        bqkv_sa = jnp.concatenate([bsa[0] * inv_scale, bsa[1], bsa[2]]
                                  ).reshape(1, 3 * dim)
        wo_sa = wsa[3].reshape(n_heads, dph, dim)
        bo_sa = bsa[3].reshape(1, dim)
        wq_ea = wea[0] * inv_scale
        bq_ea = (bea[0] * inv_scale).reshape(1, dim)
        wkv_ea = jnp.concatenate([wea[1], wea[2]], axis=1)
        bkv_ea = jnp.concatenate([bea[1], bea[2]]).reshape(1, 2 * dim)
        wo_ea = wea[3].reshape(n_heads, dph, dim)
        bo_ea = bea[3].reshape(1, dim)

        # Precomputed masks (no per-grid-step iota rebuild in the kernel).
        r = jnp.arange(T)
        causal_add = jnp.where(r[None, :] > r[:, None],
                               jnp.float32(_NEG_INF), 0.0).astype(f32)  # (T,T)
        enc_add = jnp.where(encoder_mask.reshape(B, 1, S) == 0,
                            jnp.float32(_NEG_INF), 0.0).astype(f32)     # (B,1,S)

        args = (
            x.astype(f32), encoder_output.astype(f32), enc_add, causal_add,
            wqkv_sa.astype(cdt), bqkv_sa.astype(f32),
            wo_sa.astype(cdt), bo_sa.astype(f32),
            wq_ea.astype(cdt), bq_ea.astype(f32),
            wkv_ea.astype(cdt), bkv_ea.astype(f32),
            wo_ea.astype(cdt), bo_ea.astype(f32),
            lng.astype(f32), lnb.astype(f32),
            w1.astype(cdt), b1.reshape(1, ffn_dim).astype(f32),
            w2.astype(cdt), b2.reshape(1, dim).astype(f32),
        )

        in_specs = [
            pl.BlockSpec((BB, T, dim), lambda b: (b, 0, 0)),   # x
            pl.BlockSpec((BB, S, dim), lambda b: (b, 0, 0)),   # encoder_output
            pl.BlockSpec((BB, 1, S), lambda b: (b, 0, 0)),     # additive enc mask
            const_spec((T, T)),                                # causal additive mask
            const_spec((dim, 3 * dim)), const_spec((1, 3 * dim)),   # self QKV
            const_spec((n_heads, dph, dim)), const_spec((1, dim)),  # self out proj
            const_spec((dim, dim)), const_spec((1, dim)),            # cross Q
            const_spec((dim, 2 * dim)), const_spec((1, 2 * dim)),    # cross KV
            const_spec((n_heads, dph, dim)), const_spec((1, dim)),  # cross out proj
            const_spec((3, dim)), const_spec((3, dim)),              # LN gamma/beta
            const_spec((dim, ffn_dim)), const_spec((1, ffn_dim)),    # FFN lin1
            const_spec((ffn_dim, dim)), const_spec((1, dim)),        # FFN lin2
        ]

        fn = pl.pallas_call(
            kernel,
            out_shape=jax.ShapeDtypeStruct((B, T, dim), x.dtype),
            grid=(B // BB,),
            in_specs=in_specs,
            out_specs=pl.BlockSpec((BB, T, dim), lambda b: (b, 0, 0)),
            compiler_params=pltpu.CompilerParams(
                dimension_semantics=("parallel",),
                vmem_limit_bytes=_vmem_limit_bytes(),
            ),
        )
        return fn(*args)

    return call


# ---------------- pure-JAX reference (for correctness check) ----------------
def reference_layer(x, enc, enc_mask, params, n_heads, eps=1e-5):
    wsa, bsa, wea, bea, lng, lnb, w1, b1, w2, b2 = params
    B, T, D = x.shape
    S = enc.shape[1]
    dph = D // n_heads
    scale = math.sqrt(dph)

    def ln(v, g, bta):
        mu = v.mean(-1, keepdims=True)
        var = ((v - mu) ** 2).mean(-1, keepdims=True)
        return (v - mu) / jnp.sqrt(var + eps) * g + bta

    def split_heads(t):
        b, s, _ = t.shape
        return t.reshape(b, s, n_heads, dph).transpose(0, 2, 1, 3)

    def mha(q_in, kv_in, W, b, mask_bool):
        q = split_heads(q_in @ W[0] + b[0])
        k = split_heads(kv_in @ W[1] + b[1])
        v = split_heads(kv_in @ W[2] + b[2])
        s = jnp.einsum('bhqd,bhkd->bhqk', q, k)
        s = jnp.where(mask_bool, -1e20, s) / scale
        p = jax.nn.softmax(s, axis=-1)
        a = jnp.einsum('bhqk,bhkd->bhqd', p, v)
        a = a.transpose(0, 2, 1, 3).reshape(q_in.shape[0], q_in.shape[1], D)
        return a @ W[3] + b[3]

    causal = (jnp.arange(T)[None, :] > jnp.arange(T)[:, None])[None, None]
    encm = (enc_mask == 0)[:, None, None, :]

    r = x
    h = mha(x, x, wsa, bsa, causal)
    h = ln(h + r, lng[0], lnb[0])
    r = h
    h2 = mha(h, enc, wea, bea, encm)
    h2 = ln(r + h2, lng[1], lnb[1])
    r = h2
    ff = jax.nn.relu(h2 @ w1 + b1) @ w2 + b2
    return ln(r + ff, lng[2], lnb[2])


if __name__ == "__main__":
    B, T, S = 2, 8, 8
    D, H, F = 32, 4, 64

    key = jax.random.PRNGKey(0)
    ks = jax.random.split(key, 20)

    def xavier(k, fan_in, fan_out):
        std = math.sqrt(2.0 / (fan_in + fan_out))
        return std * jax.random.normal(k, (fan_in, fan_out), jnp.float32)

    # stacked attention weights in (in, out) layout, order q, k, v, out
    wsa = jnp.stack([xavier(ks[i], D, D) for i in range(4)])
    bsa = 0.02 * jax.random.normal(ks[4], (4, D), jnp.float32)
    wea = jnp.stack([xavier(ks[5 + i], D, D) for i in range(4)])
    bea = 0.02 * jax.random.normal(ks[9], (4, D), jnp.float32)
    lng = jnp.ones((3, D), jnp.float32)    # LayerNorm gamma (PyTorch default)
    lnb = jnp.zeros((3, D), jnp.float32)   # LayerNorm beta
    w1 = xavier(ks[10], D, F)
    b1 = 0.02 * jax.random.normal(ks[11], (1, F), jnp.float32)
    w2 = xavier(ks[12], F, D)
    b2 = 0.02 * jax.random.normal(ks[13], (1, D), jnp.float32)
    params = (wsa, bsa, wea, bea, lng, lnb, w1, b1, w2, b2)

    x = jax.random.normal(ks[14], (B, T, D), jnp.float32)
    enc = jax.random.normal(ks[15], (B, S, D), jnp.float32)
    # encoder mask: batch 0 full length, batch 1 length 5
    lens = jnp.array([S, 5])
    enc_mask = (jnp.arange(S)[None, :] < lens[:, None]).astype(jnp.float32)

    ref = reference_layer(x, enc, enc_mask, params, H)

    # Perf config: bf16 matmuls / f32 residual-softmax-LN path; block_batch=1
    # keeps the parallel grid extent at 2 (both v7x TensorCores busy).
    layer_bf16 = make_decoder_layer(H, D, F, T, S,
                                    compute_dtype=jnp.bfloat16, block_batch=1)
    out_bf16 = jax.block_until_ready(layer_bf16(x, enc, enc_mask, params))
    assert out_bf16.shape == (B, T, D)
    assert out_bf16.dtype == x.dtype
    # loose tolerance: expected bf16 rounding inside the matmuls (sanity check)
    assert jnp.allclose(out_bf16, ref, rtol=1e-1, atol=1e-1), "bf16 mismatch"

    # Exact-precision config: f32 matmuls end-to-end.
    layer_f32 = make_decoder_layer(H, D, F, T, S,
                                   compute_dtype=jnp.float32, block_batch=1)
    out_f32 = jax.block_until_ready(layer_f32(x, enc, enc_mask, params))
    assert jnp.allclose(out_f32, ref, rtol=2e-3, atol=2e-3), "f32 mismatch"

    print("KERNEL_OK")
</pallas_src>

<mosaic_0001>
module attributes {stable_mosaic.version = 11 : i64} {
  func.func @probe_kernel(%arg0: i32, %arg1: memref<8x128xf32, #tpu.memory_space<vmem>>, %arg2: memref<1x8x128xf32, #tpu.memory_space<vmem>>, %arg3: memref<1x8x128xf32, #tpu.memory_space<vmem>>) attributes {dimension_semantics = [#tpu.dimension_semantics<arbitrary>], iteration_bounds = array<i64: 2>, scalar_prefetch = 0 : i64, scratch_operands = 0 : i64, tpu.core_type = #tpu.core_type<tc>, window_params = [{pipeline_mode = #tpu.pipeline_mode<synchronous>, transform_indices = @transform_0, window_bounds = array<i64: 8, 128>}, {transform_indices = @transform_1, window_bounds = array<i64: 1, 8, 128>}, {transform_indices = @transform_2, window_bounds = array<i64: 1, 8, 128>}]} {
    %c0 = arith.constant 0 : index
    %c0_0 = arith.constant 0 : index
    %c0_1 = arith.constant 0 : index
    %0 = vector.load %arg2[%c0, %c0_0, %c0_1] : memref<1x8x128xf32, #tpu.memory_space<vmem>>, vector<1x8x128xf32>
    %c0_2 = arith.constant 0 : index
    %c0_3 = arith.constant 0 : index
    %1 = vector.load %arg1[%c0_2, %c0_3] : memref<8x128xf32, #tpu.memory_space<vmem>>, vector<8x128xf32>
    %2 = vector.shape_cast %1 : vector<8x128xf32> to vector<1x8x128xf32>
    %3 = arith.addf %0, %2 : vector<1x8x128xf32>
    %c0_4 = arith.constant 0 : index
    %c0_5 = arith.constant 0 : index
    %c0_6 = arith.constant 0 : index
    %4 = vector.load %arg3[%c0_4, %c0_5, %c0_6] : memref<1x8x128xf32, #tpu.memory_space<vmem>>, vector<1x8x128xf32>
    tpu.vector_store %arg3[%c0_4, %c0_5, %c0_6], %3 {strides = array<i32>} : memref<1x8x128xf32, #tpu.memory_space<vmem>>, vector<1x8x128xf32>,
    return
  }
  func.func @transform_0(%arg0: i32) -> (i32, i32) {
    %c0_i32 = arith.constant 0 : i32
    %c0_i32_0 = arith.constant 0 : i32
    %c0_i32_1 = arith.constant 0 : i32
    return %c0_i32, %c0_i32_0 : i32, i32
  }
  func.func @transform_1(%arg0: i32) -> (i32, i32, i32) {
    %c0_i32 = arith.constant 0 : i32
    %c0_i32_0 = arith.constant 0 : i32
    %c0_i32_1 = arith.constant 0 : i32
    return %arg0, %c0_i32, %c0_i32_0 : i32, i32, i32
  }
  func.func @transform_2(%arg0: i32) -> (i32, i32, i32) {
    %c0_i32 = arith.constant 0 : i32
    %c0_i32_0 = arith.constant 0 : i32
    %c0_i32_1 = arith.constant 0 : i32
    return %arg0, %c0_i32, %c0_i32_0 : i32, i32, i32
  }
}

module attributes {stable_mosaic.version = 11 : i64} {
  func.func @kernel(%arg0: i32, %arg1: memref<1x8x32xf32, #tpu.memory_space<vmem>>, %arg2: memref<1x8x32xf32, #tpu.memory_space<vmem>>, %arg3: memref<1x1x8xf32, #tpu.memory_space<vmem>>, %arg4: memref<8x8xf32, #tpu.memory_space<vmem>>, %arg5: memref<32x96xbf16, #tpu.memory_space<vmem>>, %arg6: memref<1x96xf32, #tpu.memory_space<vmem>>, %arg7: memref<4x8x32xbf16, #tpu.memory_space<vmem>>, %arg8: memref<1x32xf32, #tpu.memory_space<vmem>>, %arg9: memref<32x32xbf16, #tpu.memory_space<vmem>>, %arg10: memref<1x32xf32, #tpu.memory_space<vmem>>, %arg11: memref<32x64xbf16, #tpu.memory_space<vmem>>, %arg12: memref<1x64xf32, #tpu.memory_space<vmem>>, %arg13: memref<4x8x32xbf16, #tpu.memory_space<vmem>>, %arg14: memref<1x32xf32, #tpu.memory_space<vmem>>, %arg15: memref<3x32xf32, #tpu.memory_space<vmem>>, %arg16: memref<3x32xf32, #tpu.memory_space<vmem>>, %arg17: memref<32x64xbf16, #tpu.memory_space<vmem>>, %arg18: memref<1x64xf32, #tpu.memory_space<vmem>>, %arg19: memref<64x32xbf16, #tpu.memory_space<vmem>>, %arg20: memref<1x32xf32, #tpu.memory_space<vmem>>, %arg21: memref<1x8x32xf32, #tpu.memory_space<vmem>>) attributes {dimension_semantics = [#tpu.dimension_semantics<parallel>], iteration_bounds = array<i64: 2>, scalar_prefetch = 0 : i64, scratch_operands = 0 : i64, tpu.core_type = #tpu.core_type<tc>, window_params = [{transform_indices = @transform_0, window_bounds = array<i64: 1, 8, 32>}, {transform_indices = @transform_1, window_bounds = array<i64: 1, 8, 32>}, {transform_indices = @transform_2, window_bounds = array<i64: 1, 1, 8>}, {pipeline_mode = #tpu.pipeline_mode<synchronous>, transform_indices = @transform_3, window_bounds = array<i64: 8, 8>}, {pipeline_mode = #tpu.pipeline_mode<synchronous>, transform_indices = @transform_4, window_bounds = array<i64: 32, 96>}, {pipeline_mode = #tpu.pipeline_mode<synchronous>, transform_indices = @transform_5, window_bounds = array<i64: 1, 96>}, {pipeline_mode = #tpu.pipeline_mode<synchronous>, transform_indices = @transform_6, window_bounds = array<i64: 4, 8, 32>}, {pipeline_mode = #tpu.pipeline_mode<synchronous>, transform_indices = @transform_7, window_bounds = array<i64: 1, 32>}, {pipeline_mode = #tpu.pipeline_mode<synchronous>, transform_indices = @transform_8, window_bounds = array<i64: 32, 32>}, {pipeline_mode = #tpu.pipeline_mode<synchronous>, transform_indices = @transform_9, window_bounds = array<i64: 1, 32>}, {pipeline_mode = #tpu.pipeline_mode<synchronous>, transform_indices = @transform_10, window_bounds = array<i64: 32, 64>}, {pipeline_mode = #tpu.pipeline_mode<synchronous>, transform_indices = @transform_11, window_bounds = array<i64: 1, 64>}, {pipeline_mode = #tpu.pipeline_mode<synchronous>, transform_indices = @transform_12, window_bounds = array<i64: 4, 8, 32>}, {pipeline_mode = #tpu.pipeline_mode<synchronous>, transform_indices = @transform_13, window_bounds = array<i64: 1, 32>}, {pipeline_mode = #tpu.pipeline_mode<synchronous>, transform_indices = @transform_14, window_bounds = array<i64: 3, 32>}, {pipeline_mode = #tpu.pipeline_mode<synchronous>, transform_indices = @transform_15, window_bounds = array<i64: 3, 32>}, {pipeline_mode = #tpu.pipeline_mode<synchronous>, transform_indices = @transform_16, window_bounds = array<i64: 32, 64>}, {pipeline_mode = #tpu.pipeline_mode<synchronous>, transform_indices = @transform_17, window_bounds = array<i64: 1, 64>}, {pipeline_mode = #tpu.pipeline_mode<synchronous>, transform_indices = @transform_18, window_bounds = array<i64: 64, 32>}, {pipeline_mode = #tpu.pipeline_mode<synchronous>, transform_indices = @transform_19, window_bounds = array<i64: 1, 32>}, {transform_indices = @transform_20, window_bounds = array<i64: 1, 8, 32>}]} {
    %c0 = arith.constant 0 : index
    %c0_0 = arith.constant 0 : index
    %c0_1 = arith.constant 0 : index
    %0 = vector.load %arg1[%c0, %c0_0, %c0_1] : memref<1x8x32xf32, #tpu.memory_space<vmem>>, vector<1x8x32xf32>
    %1 = vector.shape_cast %0 : vector<1x8x32xf32> to vector<8x32xf32>
    %c0_2 = arith.constant 0 : index
    %c0_3 = arith.constant 0 : index
    %c0_4 = arith.constant 0 : index
    %2 = vector.load %arg2[%c0_2, %c0_3, %c0_4] : memref<1x8x32xf32, #tpu.memory_space<vmem>>, vector<1x8x32xf32>
    %3 = vector.shape_cast %2 : vector<1x8x32xf32> to vector<8x32xf32>
    %c0_5 = arith.constant 0 : index
    %c0_6 = arith.constant 0 : index
    %4 = vector.load %arg4[%c0_5, %c0_6] : memref<8x8xf32, #tpu.memory_space<vmem>>, vector<8x8xf32>
    %5 = vector.shape_cast %4 : vector<8x8xf32> to vector<1x8x8xf32>
    %c0_7 = arith.constant 0 : index
    %c0_8 = arith.constant 0 : index
    %c0_9 = arith.constant 0 : index
    %6 = vector.load %arg3[%c0_7, %c0_8, %c0_9] : memref<1x1x8xf32, #tpu.memory_space<vmem>>, vector<1x1x8xf32>
    %c0_10 = arith.constant 0 : index
    %c0_11 = arith.constant 0 : index
    %7 = vector.load %arg15[%c0_10, %c0_11] : memref<3x32xf32, #tpu.memory_space<vmem>>, vector<3x32xf32>
    %c0_12 = arith.constant 0 : index
    %c0_13 = arith.constant 0 : index
    %8 = vector.load %arg16[%c0_12, %c0_13] : memref<3x32xf32, #tpu.memory_space<vmem>>, vector<3x32xf32>
    %9 = arith.truncf %1 : vector<8x32xf32> to vector<8x32xbf16>
    %c0_14 = arith.constant 0 : index
    %c0_15 = arith.constant 0 : index
    %10 = vector.load %arg5[%c0_14, %c0_15] : memref<32x96xbf16, #tpu.memory_space<vmem>>, vector<32x96xbf16>
    %cst = arith.constant dense<0.000000e+00> : vector<8x96xf32>
    %11 = tpu.matmul %9, %10, %cst {dimension_numbers = #tpu.dot_dimension_numbers<[1], [0], [0], [1], [0, 0, 1, 1], [], []>} : vector<8x32xbf16>, vector<32x96xbf16>, vector<8x96xf32> -> vector<8x96xf32>
    %c0_16 = arith.constant 0 : index
    %c0_17 = arith.constant 0 : index
    %12 = vector.load %arg6[%c0_16, %c0_17] : memref<1x96xf32, #tpu.memory_space<vmem>>, vector<1x96xf32>
    %13 = vector.broadcast %12 : vector<1x96xf32> to vector<8x96xf32>
    %14 = arith.addf %11, %13 : vector<8x96xf32>
    %c0_18 = arith.constant 0 : index
    %c0_19 = arith.constant 0 : index
    %15 = vector.load %arg8[%c0_18, %c0_19] : memref<1x32xf32, #tpu.memory_space<vmem>>, vector<1x32xf32>
    %16 = vector.extract_strided_slice %14 {offsets = [0, 0], sizes = [8, 8], strides = [1, 1]} : vector<8x96xf32> to vector<8x8xf32>
    %17 = vector.shape_cast %16 : vector<8x8xf32> to vector<1x8x8xf32>
    %18 = arith.truncf %17 : vector<1x8x8xf32> to vector<1x8x8xbf16>
    %19 = vector.extract_strided_slice %14 {offsets = [0, 32], sizes = [8, 8], strides = [1, 1]} : vector<8x96xf32> to vector<8x8xf32>
    %20 = vector.shape_cast %19 : vector<8x8xf32> to vector<1x8x8xf32>
    %21 = arith.truncf %20 : vector<1x8x8xf32> to vector<1x8x8xbf16>
    %22 = vector.extract_strided_slice %14 {offsets = [0, 64], sizes = [8, 8], strides = [1, 1]} : vector<8x96xf32> to vector<8x8xf32>
    %23 = vector.shape_cast %22 : vector<8x8xf32> to vector<1x8x8xf32>
    %24 = arith.truncf %23 : vector<1x8x8xf32> to vector<1x8x8xbf16>
    "tpu.trace_start"() <{level = 10 : i32, message = "bqe,bke->bqk"}> : () -> ()
    %cst_20 = arith.constant dense<0.000000e+00> : vector<1x8x8xf32>
    %25 = tpu.matmul %18, %21, %cst_20 {dimension_numbers = #tpu.dot_dimension_numbers<[2], [2], [1], [1], [0, 0, 0, 1, 1, 1], [0], [0]>} : vector<1x8x8xbf16>, vector<1x8x8xbf16>, vector<1x8x8xf32> -> vector<1x8x8xf32>
    "tpu.trace_stop"() : () -> ()
    %26 = arith.addf %25, %5 : vector<1x8x8xf32>
    %cst_21 = arith.constant dense<0xFF800000> : vector<1x8xf32>
    %27 = vector.multi_reduction <maximumf>, %26, %cst_21 [2] : vector<1x8x8xf32> to vector<1x8xf32>
    %28 = vector.shape_cast %27 : vector<1x8xf32> to vector<1x8x1xf32>
    %29 = vector.broadcast %28 : vector<1x8x1xf32> to vector<1x8x8xf32>
    %30 = arith.subf %26, %29 : vector<1x8x8xf32>
    %31 = math.exp %30 : vector<1x8x8xf32>
    %cst_22 = arith.constant dense<0.000000e+00> : vector<1x8xf32>
    %32 = vector.multi_reduction <add>, %31, %cst_22 [2] : vector<1x8x8xf32> to vector<1x8xf32>
    %33 = vector.shape_cast %32 : vector<1x8xf32> to vector<1x8x1xf32>
    %34 = arith.truncf %31 : vector<1x8x8xf32> to vector<1x8x8xbf16>
    "tpu.trace_start"() <{level = 10 : i32, message = "bqk,bke->bqe"}> : () -> ()
    %cst_23 = arith.constant dense<0.000000e+00> : vector<1x8x8xf32>
    %35 = tpu.matmul %34, %24, %cst_23 {dimension_numbers = #tpu.dot_dimension_numbers<[2], [1], [1], [2], [0, 0, 0, 1, 1, 2], [0], [0]>} : vector<1x8x8xbf16>, vector<1x8x8xbf16>, vector<1x8x8xf32> -> vector<1x8x8xf32>
    "tpu.trace_stop"() : () -> ()
    %36 = tpu.reciprocal %33 {approx = true} : vector<1x8x1xf32> -> vector<1x8x1xf32>
    %37 = vector.broadcast %36 : vector<1x8x1xf32> to vector<1x8x8xf32>
    %38 = arith.mulf %35, %37 : vector<1x8x8xf32>
    %39 = vector.shape_cast %38 : vector<1x8x8xf32> to vector<8x8xf32>
    %40 = arith.truncf %39 : vector<8x8xf32> to vector<8x8xbf16>
    %c0_24 = arith.constant 0 : index
    %c0_25 = arith.constant 0 : index
    %c0_26 = arith.constant 0 : index
    %41 = vector.load %arg7[%c0_24, %c0_25, %c0_26] : memref<4x8x32xbf16, #tpu.memory_space<vmem>>, vector<1x8x32xbf16>
    %42 = vector.shape_cast %41 : vector<1x8x32xbf16> to vector<8x32xbf16>
    %cst_27 = arith.constant dense<0.000000e+00> : vector<8x32xf32>
    %43 = tpu.matmul %40, %42, %cst_27 {dimension_numbers = #tpu.dot_dimension_numbers<[1], [0], [0], [1], [0, 0, 1, 1], [], []>} : vector<8x8xbf16>, vector<8x32xbf16>, vector<8x32xf32> -> vector<8x32xf32>
    %44 = vector.extract_strided_slice %14 {offsets = [0, 8], sizes = [8, 8], strides = [1, 1]} : vector<8x96xf32> to vector<8x8xf32>
    %45 = vector.shape_cast %44 : vector<8x8xf32> to vector<1x8x8xf32>
    %46 = arith.truncf %45 : vector<1x8x8xf32> to vector<1x8x8xbf16>
    %47 = vector.extract_strided_slice %14 {offsets = [0, 40], sizes = [8, 8], strides = [1, 1]} : vector<8x96xf32> to vector<8x8xf32>
    %48 = vector.shape_cast %47 : vector<8x8xf32> to vector<1x8x8xf32>
    %49 = arith.truncf %48 : vector<1x8x8xf32> to vector<1x8x8xbf16>
    %50 = vector.extract_strided_slice %14 {offsets = [0, 72], sizes = [8, 8], strides = [1, 1]} : vector<8x96xf32> to vector<8x8xf32>
    %51 = vector.shape_cast %50 : vector<8x8xf32> to vector<1x8x8xf32>
    %52 = arith.truncf %51 : vector<1x8x8xf32> to vector<1x8x8xbf16>
    "tpu.trace_start"() <{level = 10 : i32, message = "bqe,bke->bqk"}> : () -> ()
    %cst_28 = arith.constant dense<0.000000e+00> : vector<1x8x8xf32>
    %53 = tpu.matmul %46, %49, %cst_28 {dimension_numbers = #tpu.dot_dimension_numbers<[2], [2], [1], [1], [0, 0, 0, 1, 1, 1], [0], [0]>} : vector<1x8x8xbf16>, vector<1x8x8xbf16>, vector<1x8x8xf32> -> vector<1x8x8xf32>
    "tpu.trace_stop"() : () -> ()
    %54 = arith.addf %53, %5 : vector<1x8x8xf32>
    %cst_29 = arith.constant dense<0xFF800000> : vector<1x8xf32>
    %55 = vector.multi_reduction <maximumf>, %54, %cst_29 [2] : vector<1x8x8xf32> to vector<1x8xf32>
    %56 = vector.shape_cast %55 : vector<1x8xf32> to vector<1x8x1xf32>
    %57 = vector.broadcast %56 : vector<1x8x1xf32> to vector<1x8x8xf32>
    %58 = arith.subf %54, %57 : vector<1x8x8xf32>
    %59 = math.exp %58 : vector<1x8x8xf32>
    %cst_30 = arith.constant dense<0.000000e+00> : vector<1x8xf32>
    %60 = vector.multi_reduction <add>, %59, %cst_30 [2] : vector<1x8x8xf32> to vector<1x8xf32>
    %61 = vector.shape_cast %60 : vector<1x8xf32> to vector<1x8x1xf32>
    %62 = arith.truncf %59 : vector<1x8x8xf32> to vector<1x8x8xbf16>
    "tpu.trace_start"() <{level = 10 : i32, message = "bqk,bke->bqe"}> : () -> ()
    %cst_31 = arith.constant dense<0.000000e+00> : vector<1x8x8xf32>
    %63 = tpu.matmul %62, %52, %cst_31 {dimension_numbers = #tpu.dot_dimension_numbers<[2], [1], [1], [2], [0, 0, 0, 1, 1, 2], [0], [0]>} : vector<1x8x8xbf16>, vector<1x8x8xbf16>, vector<1x8x8xf32> -> vector<1x8x8xf32>
    "tpu.trace_stop"() : () -> ()
    %64 = tpu.reciprocal %61 {approx = true} : vector<1x8x1xf32> -> vector<1x8x1xf32>
    %65 = vector.broadcast %64 : vector<1x8x1xf32> to vector<1x8x8xf32>
    %66 = arith.mulf %63, %65 : vector<1x8x8xf32>
    %67 = vector.shape_cast %66 : vector<1x8x8xf32> to vector<8x8xf32>
    %68 = arith.truncf %67 : vector<8x8xf32> to vector<8x8xbf16>
    %c1 = arith.constant 1 : index
    %c0_32 = arith.constant 0 : index
    %c0_33 = arith.constant 0 : index
    %69 = vector.load %arg7[%c1, %c0_32, %c0_33] : memref<4x8x32xbf16, #tpu.memory_space<vmem>>, vector<1x8x32xbf16>
    %70 = vector.shape_cast %69 : vector<1x8x32xbf16> to vector<8x32xbf16>
    %cst_34 = arith.constant dense<0.000000e+00> : vector<8x32xf32>
    %71 = tpu.matmul %68, %70, %cst_34 {dimension_numbers = #tpu.dot_dimension_numbers<[1], [0], [0], [1], [0, 0, 1, 1], [], []>} : vector<8x8xbf16>, vector<8x32xbf16>, vector<8x32xf32> -> vector<8x32xf32>
    %72 = arith.addf %43, %71 : vector<8x32xf32>
    %73 = vector.extract_strided_slice %14 {offsets = [0, 16], sizes = [8, 8], strides = [1, 1]} : vector<8x96xf32> to vector<8x8xf32>
    %74 = vector.shape_cast %73 : vector<8x8xf32> to vector<1x8x8xf32>
    %75 = arith.truncf %74 : vector<1x8x8xf32> to vector<1x8x8xbf16>
    %76 = vector.extract_strided_slice %14 {offsets = [0, 48], sizes = [8, 8], strides = [1, 1]} : vector<8x96xf32> to vector<8x8xf32>
    %77 = vector.shape_cast %76 : vector<8x8xf32> to vector<1x8x8xf32>
    %78 = arith.truncf %77 : vector<1x8x8xf32> to vector<1x8x8xbf16>
    %79 = vector.extract_strided_slice %14 {offsets = [0, 80], sizes = [8, 8], strides = [1, 1]} : vector<8x96xf32> to vector<8x8xf32>
    %80 = vector.shape_cast %79 : vector<8x8xf32> to vector<1x8x8xf32>
    %81 = arith.truncf %80 : vector<1x8x8xf32> to vector<1x8x8xbf16>
    "tpu.trace_start"() <{level = 10 : i32, message = "bqe,bke->bqk"}> : () -> ()
    %cst_35 = arith.constant dense<0.000000e+00> : vector<1x8x8xf32>
    %82 = tpu.matmul %75, %78, %cst_35 {dimension_numbers = #tpu.dot_dimension_numbers<[2], [2], [1], [1], [0, 0, 0, 1, 1, 1], [0], [0]>} : vector<1x8x8xbf16>, vector<1x8x8xbf16>, vector<1x8x8xf32> -> vector<1x8x8xf32>
    "tpu.trace_stop"() : () -> ()
    %83 = arith.addf %82, %5 : vector<1x8x8xf32>
    %cst_36 = arith.constant dense<0xFF800000> : vector<1x8xf32>
    %84 = vector.multi_reduction <maximumf>, %83, %cst_36 [2] : vector<1x8x8xf32> to vector<1x8xf32>
    %85 = vector.shape_cast %84 : vector<1x8xf32> to vector<1x8x1xf32>
    %86 = vector.broadcast %85 : vector<1x8x1xf32> to vector<1x8x8xf32>
    %87 = arith.subf %83, %86 : vector<1x8x8xf32>
    %88 = math.exp %87 : vector<1x8x8xf32>
    %cst_37 = arith.constant dense<0.000000e+00> : vector<1x8xf32>
    %89 = vector.multi_reduction <add>, %88, %cst_37 [2] : vector<1x8x8xf32> to vector<1x8xf32>
    %90 = vector.shape_cast %89 : vector<1x8xf32> to vector<1x8x1xf32>
    %91 = arith.truncf %88 : vector<1x8x8xf32> to vector<1x8x8xbf16>
    "tpu.trace_start"() <{level = 10 : i32, message = "bqk,bke->bqe"}> : () -> ()
    %cst_38 = arith.constant dense<0.000000e+00> : vector<1x8x8xf32>
    %92 = tpu.matmul %91, %81, %cst_38 {dimension_numbers = #tpu.dot_dimension_numbers<[2], [1], [1], [2], [0, 0, 0, 1, 1, 2], [0], [0]>} : vector<1x8x8xbf16>, vector<1x8x8xbf16>, vector<1x8x8xf32> -> vector<1x8x8xf32>
    "tpu.trace_stop"() : () -> ()
    %93 = tpu.reciprocal %90 {approx = true} : vector<1x8x1xf32> -> vector<1x8x1xf32>
    %94 = vector.broadcast %93 : vector<1x8x1xf32> to vector<1x8x8xf32>
    %95 = arith.mulf %92, %94 : vector<1x8x8xf32>
    %96 = vector.shape_cast %95 : vector<1x8x8xf32> to vector<8x8xf32>
    %97 = arith.truncf %96 : vector<8x8xf32> to vector<8x8xbf16>
    %c2 = arith.constant 2 : index
    %c0_39 = arith.constant 0 : index
    %c0_40 = arith.constant 0 : index
    %98 = vector.load %arg7[%c2, %c0_39, %c0_40] : memref<4x8x32xbf16, #tpu.memory_space<vmem>>, vector<1x8x32xbf16>
    %99 = vector.shape_cast %98 : vector<1x8x32xbf16> to vector<8x32xbf16>
    %cst_41 = arith.constant dense<0.000000e+00> : vector<8x32xf32>
    %100 = tpu.matmul %97, %99, %cst_41 {dimension_numbers = #tpu.dot_dimension_numbers<[1], [0], [0], [1], [0, 0, 1, 1], [], []>} : vector<8x8xbf16>, vector<8x32xbf16>, vector<8x32xf32> -> vector<8x32xf32>
    %101 = arith.addf %72, %100 : vector<8x32xf32>
    %102 = vector.extract_strided_slice %14 {offsets = [0, 24], sizes = [8, 8], strides = [1, 1]} : vector<8x96xf32> to vector<8x8xf32>
    %103 = vector.shape_cast %102 : vector<8x8xf32> to vector<1x8x8xf32>
    %104 = arith.truncf %103 : vector<1x8x8xf32> to vector<1x8x8xbf16>
    %105 = vector.extract_strided_slice %14 {offsets = [0, 56], sizes = [8, 8], strides = [1, 1]} : vector<8x96xf32> to vector<8x8xf32>
    %106 = vector.shape_cast %105 : vector<8x8xf32> to vector<1x8x8xf32>
    %107 = arith.truncf %106 : vector<1x8x8xf32> to vector<1x8x8xbf16>
    %108 = vector.extract_strided_slice %14 {offsets = [0, 88], sizes = [8, 8], strides = [1, 1]} : vector<8x96xf32> to vector<8x8xf32>
    %109 = vector.shape_cast %108 : vector<8x8xf32> to vector<1x8x8xf32>
    %110 = arith.truncf %109 : vector<1x8x8xf32> to vector<1x8x8xbf16>
    "tpu.trace_start"() <{level = 10 : i32, message = "bqe,bke->bqk"}> : () -> ()
    %cst_42 = arith.constant dense<0.000000e+00> : vector<1x8x8xf32>
    %111 = tpu.matmul %104, %107, %cst_42 {dimension_numbers = #tpu.dot_dimension_numbers<[2], [2], [1], [1], [0, 0, 0, 1, 1, 1], [0], [0]>} : vector<1x8x8xbf16>, vector<1x8x8xbf16>, vector<1x8x8xf32> -> vector<1x8x8xf32>
    "tpu.trace_stop"() : () -> ()
    %112 = arith.addf %111, %5 : vector<1x8x8xf32>
    %cst_43 = arith.constant dense<0xFF800000> : vector<1x8xf32>
    %113 = vector.multi_reduction <maximumf>, %112, %cst_43 [2] : vector<1x8x8xf32> to vector<1x8xf32>
    %114 = vector.shape_cast %113 : vector<1x8xf32> to vector<1x8x1xf32>
    %115 = vector.broadcast %114 : vector<1x8x1xf32> to vector<1x8x8xf32>
    %116 = arith.subf %112, %115 : vector<1x8x8xf32>
    %117 = math.exp %116 : vector<1x8x8xf32>
    %cst_44 = arith.constant dense<0.000000e+00> : vector<1x8xf32>
    %118 = vector.multi_reduction <add>, %117, %cst_44 [2] : vector<1x8x8xf32> to vector<1x8xf32>
    %119 = vector.shape_cast %118 : vector<1x8xf32> to vector<1x8x1xf32>
    %120 = arith.truncf %117 : vector<1x8x8xf32> to vector<1x8x8xbf16>
    "tpu.trace_start"() <{level = 10 : i32, message = "bqk,bke->bqe"}> : () -> ()
    %cst_45 = arith.constant dense<0.000000e+00> : vector<1x8x8xf32>
    %121 = tpu.matmul %120, %110, %cst_45 {dimension_numbers = #tpu.dot_dimension_numbers<[2], [1], [1], [2], [0, 0, 0, 1, 1, 2], [0], [0]>} : vector<1x8x8xbf16>, vector<1x8x8xbf16>, vector<1x8x8xf32> -> vector<1x8x8xf32>
    "tpu.trace_stop"() : () -> ()
    %122 = tpu.reciprocal %119 {approx = true} : vector<1x8x1xf32> -> vector<1x8x1xf32>
    %123 = vector.broadcast %122 : vector<1x8x1xf32> to vector<1x8x8xf32>
    %124 = arith.mulf %121, %123 : vector<1x8x8xf32>
    %125 = vector.shape_cast %124 : vector<1x8x8xf32> to vector<8x8xf32>
    %126 = arith.truncf %125 : vector<8x8xf32> to vector<8x8xbf16>
    %c3 = arith.constant 3 : index
    %c0_46 = arith.constant 0 : index
    %c0_47 = arith.constant 0 : index
    %127 = vector.load %arg7[%c3, %c0_46, %c0_47] : memref<4x8x32xbf16, #tpu.memory_space<vmem>>, vector<1x8x32xbf16>
    %128 = vector.shape_cast %127 : vector<1x8x32xbf16> to vector<8x32xbf16>
    %cst_48 = arith.constant dense<0.000000e+00> : vector<8x32xf32>
    %129 = tpu.matmul %126, %128, %cst_48 {dimension_numbers = #tpu.dot_dimension_numbers<[1], [0], [0], [1], [0, 0, 1, 1], [], []>} : vector<8x8xbf16>, vector<8x32xbf16>, vector<8x32xf32> -> vector<8x32xf32>
    %130 = arith.addf %101, %129 : vector<8x32xf32>
    %131 = vector.broadcast %15 : vector<1x32xf32> to vector<8x32xf32>
    %132 = arith.addf %130, %131 : vector<8x32xf32>
    %133 = arith.addf %132, %1 : vector<8x32xf32>
    %134 = vector.extract_strided_slice %7 {offsets = [0, 0], sizes = [1, 32], strides = [1, 1]} : vector<3x32xf32> to vector<1x32xf32>
    %135 = vector.extract_strided_slice %8 {offsets = [0, 0], sizes = [1, 32], strides = [1, 1]} : vector<3x32xf32> to vector<1x32xf32>
    %cst_49 = arith.constant dense<0.000000e+00> : vector<8xf32>
    %136 = vector.multi_reduction <add>, %133, %cst_49 [1] : vector<8x32xf32> to vector<8xf32>
    %137 = vector.shape_cast %136 : vector<8xf32> to vector<8x1xf32>
    %cst_50 = arith.constant 3.200000e+01 : f32
    %138 = vector.broadcast %cst_50 : f32 to vector<8x1xf32>
    %139 = arith.divf %137, %138 : vector<8x1xf32>
    %140 = vector.broadcast %139 : vector<8x1xf32> to vector<8x32xf32>
    %141 = arith.subf %133, %140 : vector<8x32xf32>
    %142 = arith.mulf %141, %141 : vector<8x32xf32>
    %cst_51 = arith.constant dense<0.000000e+00> : vector<8xf32>
    %143 = vector.multi_reduction <add>, %142, %cst_51 [1] : vector<8x32xf32> to vector<8xf32>
    %144 = vector.shape_cast %143 : vector<8xf32> to vector<8x1xf32>
    %cst_52 = arith.constant 3.200000e+01 : f32
    %145 = vector.broadcast %cst_52 : f32 to vector<8x1xf32>
    %146 = arith.divf %144, %145 : vector<8x1xf32>
    %cst_53 = arith.constant 9.99999974E-6 : f32
    %147 = vector.broadcast %cst_53 : f32 to vector<8x1xf32>
    %148 = arith.addf %146, %147 : vector<8x1xf32>
    %149 = math.rsqrt %148 : vector<8x1xf32>
    %150 = vector.broadcast %149 : vector<8x1xf32> to vector<8x32xf32>
    %151 = arith.mulf %141, %150 : vector<8x32xf32>
    %152 = vector.broadcast %134 : vector<1x32xf32> to vector<8x32xf32>
    %153 = arith.mulf %151, %152 : vector<8x32xf32>
    %154 = vector.broadcast %135 : vector<1x32xf32> to vector<8x32xf32>
    %155 = arith.addf %153, %154 : vector<8x32xf32>
    %156 = arith.truncf %155 : vector<8x32xf32> to vector<8x32xbf16>
    %c0_54 = arith.constant 0 : index
    %c0_55 = arith.constant 0 : index
    %157 = vector.load %arg9[%c0_54, %c0_55] : memref<32x32xbf16, #tpu.memory_space<vmem>>, vector<32x32xbf16>
    %cst_56 = arith.constant dense<0.000000e+00> : vector<8x32xf32>
    %158 = tpu.matmul %156, %157, %cst_56 {dimension_numbers = #tpu.dot_dimension_numbers<[1], [0], [0], [1], [0, 0, 1, 1], [], []>} : vector<8x32xbf16>, vector<32x32xbf16>, vector<8x32xf32> -> vector<8x32xf32>
    %c0_57 = arith.constant 0 : index
    %c0_58 = arith.constant 0 : index
    %159 = vector.load %arg10[%c0_57, %c0_58] : memref<1x32xf32, #tpu.memory_space<vmem>>, vector<1x32xf32>
    %160 = vector.broadcast %159 : vector<1x32xf32> to vector<8x32xf32>
    %161 = arith.addf %158, %160 : vector<8x32xf32>
    %162 = arith.truncf %3 : vector<8x32xf32> to vector<8x32xbf16>
    %c0_59 = arith.constant 0 : index
    %c0_60 = arith.constant 0 : index
    %163 = vector.load %arg11[%c0_59, %c0_60] : memref<32x64xbf16, #tpu.memory_space<vmem>>, vector<32x64xbf16>
    %cst_61 = arith.constant dense<0.000000e+00> : vector<8x64xf32>
    %164 = tpu.matmul %162, %163, %cst_61 {dimension_numbers = #tpu.dot_dimension_numbers<[1], [0], [0], [1], [0, 0, 1, 1], [], []>} : vector<8x32xbf16>, vector<32x64xbf16>, vector<8x64xf32> -> vector<8x64xf32>
    %c0_62 = arith.constant 0 : index
    %c0_63 = arith.constant 0 : index
    %165 = vector.load %arg12[%c0_62, %c0_63] : memref<1x64xf32, #tpu.memory_space<vmem>>, vector<1x64xf32>
    %166 = vector.broadcast %165 : vector<1x64xf32> to vector<8x64xf32>
    %167 = arith.addf %164, %166 : vector<8x64xf32>
    %c0_64 = arith.constant 0 : index
    %c0_65 = arith.constant 0 : index
    %168 = vector.load %arg14[%c0_64, %c0_65] : memref<1x32xf32, #tpu.memory_space<vmem>>, vector<1x32xf32>
    %169 = vector.extract_strided_slice %161 {offsets = [0, 0], sizes = [8, 8], strides = [1, 1]} : vector<8x32xf32> to vector<8x8xf32>
    %170 = vector.shape_cast %169 : vector<8x8xf32> to vector<1x8x8xf32>
    %171 = arith.truncf %170 : vector<1x8x8xf32> to vector<1x8x8xbf16>
    %172 = vector.extract_strided_slice %167 {offsets = [0, 0], sizes = [8, 8], strides = [1, 1]} : vector<8x64xf32> to vector<8x8xf32>
    %173 = vector.shape_cast %172 : vector<8x8xf32> to vector<1x8x8xf32>
    %174 = arith.truncf %173 : vector<1x8x8xf32> to vector<1x8x8xbf16>
    %175 = vector.extract_strided_slice %167 {offsets = [0, 32], sizes = [8, 8], strides = [1, 1]} : vector<8x64xf32> to vector<8x8xf32>
    %176 = vector.shape_cast %175 : vector<8x8xf32> to vector<1x8x8xf32>
    %177 = arith.truncf %176 : vector<1x8x8xf32> to vector<1x8x8xbf16>
    "tpu.trace_start"() <{level = 10 : i32, message = "bqe,bke->bqk"}> : () -> ()
    %cst_66 = arith.constant dense<0.000000e+00> : vector<1x8x8xf32>
    %178 = tpu.matmul %171, %174, %cst_66 {dimension_numbers = #tpu.dot_dimension_numbers<[2], [2], [1], [1], [0, 0, 0, 1, 1, 1], [0], [0]>} : vector<1x8x8xbf16>, vector<1x8x8xbf16>, vector<1x8x8xf32> -> vector<1x8x8xf32>
    "tpu.trace_stop"() : () -> ()
    %179 = vector.broadcast %6 : vector<1x1x8xf32> to vector<1x8x8xf32>
    %180 = arith.addf %178, %179 : vector<1x8x8xf32>
    %cst_67 = arith.constant dense<0xFF800000> : vector<1x8xf32>
    %181 = vector.multi_reduction <maximumf>, %180, %cst_67 [2] : vector<1x8x8xf32> to vector<1x8xf32>
    %182 = vector.shape_cast %181 : vector<1x8xf32> to vector<1x8x1xf32>
    %183 = vector.broadcast %182 : vector<1x8x1xf32> to vector<1x8x8xf32>
    %184 = arith.subf %180, %183 : vector<1x8x8xf32>
    %185 = math.exp %184 : vector<1x8x8xf32>
    %cst_68 = arith.constant dense<0.000000e+00> : vector<1x8xf32>
    %186 = vector.multi_reduction <add>, %185, %cst_68 [2] : vector<1x8x8xf32> to vector<1x8xf32>
    %187 = vector.shape_cast %186 : vector<1x8xf32> to vector<1x8x1xf32>
    %188 = arith.truncf %185 : vector<1x8x8xf32> to vector<1x8x8xbf16>
    "tpu.trace_start"() <{level = 10 : i32, message = "bqk,bke->bqe"}> : () -> ()
    %cst_69 = arith.constant dense<0.000000e+00> : vector<1x8x8xf32>
    %189 = tpu.matmul %188, %177, %cst_69 {dimension_numbers = #tpu.dot_dimension_numbers<[2], [1], [1], [2], [0, 0, 0, 1, 1, 2], [0], [0]>} : vector<1x8x8xbf16>, vector<1x8x8xbf16>, vector<1x8x8xf32> -> vector<1x8x8xf32>
    "tpu.trace_stop"() : () -> ()
    %190 = tpu.reciprocal %187 {approx = true} : vector<1x8x1xf32> -> vector<1x8x1xf32>
    %191 = vector.broadcast %190 : vector<1x8x1xf32> to vector<1x8x8xf32>
    %192 = arith.mulf %189, %191 : vector<1x8x8xf32>
    %193 = vector.shape_cast %192 : vector<1x8x8xf32> to vector<8x8xf32>
    %194 = arith.truncf %193 : vector<8x8xf32> to vector<8x8xbf16>
    %c0_70 = arith.constant 0 : index
    %c0_71 = arith.constant 0 : index
    %c0_72 = arith.constant 0 : index
    %195 = vector.load %arg13[%c0_70, %c0_71, %c0_72] : memref<4x8x32xbf16, #tpu.memory_space<vmem>>, vector<1x8x32xbf16>
    %196 = vector.shape_cast %195 : vector<1x8x32xbf16> to vector<8x32xbf16>
    %cst_73 = arith.constant dense<0.000000e+00> : vector<8x32xf32>
    %197 = tpu.matmul %194, %196, %cst_73 {dimension_numbers = #tpu.dot_dimension_numbers<[1], [0], [0], [1], [0, 0, 1, 1], [], []>} : vector<8x8xbf16>, vector<8x32xbf16>, vector<8x32xf32> -> vector<8x32xf32>
    %198 = vector.extract_strided_slice %161 {offsets = [0, 8], sizes = [8, 8], strides = [1, 1]} : vector<8x32xf32> to vector<8x8xf32>
    %199 = vector.shape_cast %198 : vector<8x8xf32> to vector<1x8x8xf32>
    %200 = arith.truncf %199 : vector<1x8x8xf32> to vector<1x8x8xbf16>
    %201 = vector.extract_strided_slice %167 {offsets = [0, 8], sizes = [8, 8], strides = [1, 1]} : vector<8x64xf32> to vector<8x8xf32>
    %202 = vector.shape_cast %201 : vector<8x8xf32> to vector<1x8x8xf32>
    %203 = arith.truncf %202 : vector<1x8x8xf32> to vector<1x8x8xbf16>
    %204 = vector.extract_strided_slice %167 {offsets = [0, 40], sizes = [8, 8], strides = [1, 1]} : vector<8x64xf32> to vector<8x8xf32>
    %205 = vector.shape_cast %204 : vector<8x8xf32> to vector<1x8x8xf32>
    %206 = arith.truncf %205 : vector<1x8x8xf32> to vector<1x8x8xbf16>
    "tpu.trace_start"() <{level = 10 : i32, message = "bqe,bke->bqk"}> : () -> ()
    %cst_74 = arith.constant dense<0.000000e+00> : vector<1x8x8xf32>
    %207 = tpu.matmul %200, %203, %cst_74 {dimension_numbers = #tpu.dot_dimension_numbers<[2], [2], [1], [1], [0, 0, 0, 1, 1, 1], [0], [0]>} : vector<1x8x8xbf16>, vector<1x8x8xbf16>, vector<1x8x8xf32> -> vector<1x8x8xf32>
    "tpu.trace_stop"() : () -> ()
    %208 = vector.broadcast %6 : vector<1x1x8xf32> to vector<1x8x8xf32>
    %209 = arith.addf %207, %208 : vector<1x8x8xf32>
    %cst_75 = arith.constant dense<0xFF800000> : vector<1x8xf32>
    %210 = vector.multi_reduction <maximumf>, %209, %cst_75 [2] : vector<1x8x8xf32> to vector<1x8xf32>
    %211 = vector.shape_cast %210 : vector<1x8xf32> to vector<1x8x1xf32>
    %212 = vector.broadcast %211 : vector<1x8x1xf32> to vector<1x8x8xf32>
    %213 = arith.subf %209, %212 : vector<1x8x8xf32>
    %214 = math.exp %213 : vector<1x8x8xf32>
    %cst_76 = arith.constant dense<0.000000e+00> : vector<1x8xf32>
    %215 = vector.multi_reduction <add>, %214, %cst_76 [2] : vector<1x8x8xf32> to vector<1x8xf32>
    %216 = vector.shape_cast %215 : vector<1x8xf32> to vector<1x8x1xf32>
    %217 = arith.truncf %214 : vector<1x8x8xf32> to vector<1x8x8xbf16>
    "tpu.trace_start"() <{level = 10 : i32, message = "bqk,bke->bqe"}> : () -> ()
    %cst_77 = arith.constant dense<0.000000e+00> : vector<1x8x8xf32>
    %218 = tpu.matmul %217, %206, %cst_77 {dimension_numbers = #tpu.dot_dimension_numbers<[2], [1], [1], [2], [0, 0, 0, 1, 1, 2], [0], [0]>} : vector<1x8x8xbf16>, vector<1x8x8xbf16>, vector<1x8x8xf32> -> vector<1x8x8xf32>
    "tpu.trace_stop"() : () -> ()
    %219 = tpu.reciprocal %216 {approx = true} : vector<1x8x1xf32> -> vector<1x8x1xf32>
    %220 = vector.broadcast %219 : vector<1x8x1xf32> to vector<1x8x8xf32>
    %221 = arith.mulf %218, %220 : vector<1x8x8xf32>
    %222 = vector.shape_cast %221 : vector<1x8x8xf32> to vector<8x8xf32>
    %223 = arith.truncf %222 : vector<8x8xf32> to vector<8x8xbf16>
    %c1_78 = arith.constant 1 : index
    %c0_79 = arith.constant 0 : index
    %c0_80 = arith.constant 0 : index
    %224 = vector.load %arg13[%c1_78, %c0_79, %c0_80] : memref<4x8x32xbf16, #tpu.memory_space<vmem>>, vector<1x8x32xbf16>
    %225 = vector.shape_cast %224 : vector<1x8x32xbf16> to vector<8x32xbf16>
    %cst_81 = arith.constant dense<0.000000e+00> : vector<8x32xf32>
    %226 = tpu.matmul %223, %225, %cst_81 {dimension_numbers = #tpu.dot_dimension_numbers<[1], [0], [0], [1], [0, 0, 1, 1], [], []>} : vector<8x8xbf16>, vector<8x32xbf16>, vector<8x32xf32> -> vector<8x32xf32>
    %227 = arith.addf %197, %226 : vector<8x32xf32>
    %228 = vector.extract_strided_slice %161 {offsets = [0, 16], sizes = [8, 8], strides = [1, 1]} : vector<8x32xf32> to vector<8x8xf32>
    %229 = vector.shape_cast %228 : vector<8x8xf32> to vector<1x8x8xf32>
    %230 = arith.truncf %229 : vector<1x8x8xf32> to vector<1x8x8xbf16>
    %231 = vector.extract_strided_slice %167 {offsets = [0, 16], sizes = [8, 8], strides = [1, 1]} : vector<8x64xf32> to vector<8x8xf32>
    %232 = vector.shape_cast %231 : vector<8x8xf32> to vector<1x8x8xf32>
    %233 = arith.truncf %232 : vector<1x8x8xf32> to vector<1x8x8xbf16>
    %234 = vector.extract_strided_slice %167 {offsets = [0, 48], sizes = [8, 8], strides = [1, 1]} : vector<8x64xf32> to vector<8x8xf32>
    %235 = vector.shape_cast %234 : vector<8x8xf32> to vector<1x8x8xf32>
    %236 = arith.truncf %235 : vector<1x8x8xf32> to vector<1x8x8xbf16>
    "tpu.trace_start"() <{level = 10 : i32, message = "bqe,bke->bqk"}> : () -> ()
    %cst_82 = arith.constant dense<0.000000e+00> : vector<1x8x8xf32>
    %237 = tpu.matmul %230, %233, %cst_82 {dimension_numbers = #tpu.dot_dimension_numbers<[2], [2], [1], [1], [0, 0, 0, 1, 1, 1], [0], [0]>} : vector<1x8x8xbf16>, vector<1x8x8xbf16>, vector<1x8x8xf32> -> vector<1x8x8xf32>
    "tpu.trace_stop"() : () -> ()
    %238 = vector.broadcast %6 : vector<1x1x8xf32> to vector<1x8x8xf32>
    %239 = arith.addf %237, %238 : vector<1x8x8xf32>
    %cst_83 = arith.constant dense<0xFF800000> : vector<1x8xf32>
    %240 = vector.multi_reduction <maximumf>, %239, %cst_83 [2] : vector<1x8x8xf32> to vector<1x8xf32>
    %241 = vector.shape_cast %240 : vector<1x8xf32> to vector<1x8x1xf32>
    %242 = vector.broadcast %241 : vector<1x8x1xf32> to vector<1x8x8xf32>
    %243 = arith.subf %239, %242 : vector<1x8x8xf32>
    %244 = math.exp %243 : vector<1x8x8xf32>
    %cst_84 = arith.constant dense<0.000000e+00> : vector<1x8xf32>
    %245 = vector.multi_reduction <add>, %244, %cst_84 [2] : vector<1x8x8xf32> to vector<1x8xf32>
    %246 = vector.shape_cast %245 : vector<1x8xf32> to vector<1x8x1xf32>
    %247 = arith.truncf %244 : vector<1x8x8xf32> to vector<1x8x8xbf16>
    "tpu.trace_start"() <{level = 10 : i32, message = "bqk,bke->bqe"}> : () -> ()
    %cst_85 = arith.constant dense<0.000000e+00> : vector<1x8x8xf32>
    %248 = tpu.matmul %247, %236, %cst_85 {dimension_numbers = #tpu.dot_dimension_numbers<[2], [1], [1], [2], [0, 0, 0, 1, 1, 2], [0], [0]>} : vector<1x8x8xbf16>, vector<1x8x8xbf16>, vector<1x8x8xf32> -> vector<1x8x8xf32>
    "tpu.trace_stop"() : () -> ()
    %249 = tpu.reciprocal %246 {approx = true} : vector<1x8x1xf32> -> vector<1x8x1xf32>
    %250 = vector.broadcast %249 : vector<1x8x1xf32> to vector<1x8x8xf32>
    %251 = arith.mulf %248, %250 : vector<1x8x8xf32>
    %252 = vector.shape_cast %251 : vector<1x8x8xf32> to vector<8x8xf32>
    %253 = arith.truncf %252 : vector<8x8xf32> to vector<8x8xbf16>
    %c2_86 = arith.constant 2 : index
    %c0_87 = arith.constant 0 : index
    %c0_88 = arith.constant 0 : index
    %254 = vector.load %arg13[%c2_86, %c0_87, %c0_88] : memref<4x8x32xbf16, #tpu.memory_space<vmem>>, vector<1x8x32xbf16>
    %255 = vector.shape_cast %254 : vector<1x8x32xbf16> to vector<8x32xbf16>
    %cst_89 = arith.constant dense<0.000000e+00> : vector<8x32xf32>
    %256 = tpu.matmul %253, %255, %cst_89 {dimension_numbers = #tpu.dot_dimension_numbers<[1], [0], [0], [1], [0, 0, 1, 1], [], []>} : vector<8x8xbf16>, vector<8x32xbf16>, vector<8x32xf32> -> vector<8x32xf32>
    %257 = arith.addf %227, %256 : vector<8x32xf32>
    %258 = vector.extract_strided_slice %161 {offsets = [0, 24], sizes = [8, 8], strides = [1, 1]} : vector<8x32xf32> to vector<8x8xf32>
    %259 = vector.shape_cast %258 : vector<8x8xf32> to vector<1x8x8xf32>
    %260 = arith.truncf %259 : vector<1x8x8xf32> to vector<1x8x8xbf16>
    %261 = vector.extract_strided_slice %167 {offsets = [0, 24], sizes = [8, 8], strides = [1, 1]} : vector<8x64xf32> to vector<8x8xf32>
    %262 = vector.shape_cast %261 : vector<8x8xf32> to vector<1x8x8xf32>
    %263 = arith.truncf %262 : vector<1x8x8xf32> to vector<1x8x8xbf16>
    %264 = vector.extract_strided_slice %167 {offsets = [0, 56], sizes = [8, 8], strides = [1, 1]} : vector<8x64xf32> to vector<8x8xf32>
    %265 = vector.shape_cast %264 : vector<8x8xf32> to vector<1x8x8xf32>
    %266 = arith.truncf %265 : vector<1x8x8xf32> to vector<1x8x8xbf16>
    "tpu.trace_start"() <{level = 10 : i32, message = "bqe,bke->bqk"}> : () -> ()
    %cst_90 = arith.constant dense<0.000000e+00> : vector<1x8x8xf32>
    %267 = tpu.matmul %260, %263, %cst_90 {dimension_numbers = #tpu.dot_dimension_numbers<[2], [2], [1], [1], [0, 0, 0, 1, 1, 1], [0], [0]>} : vector<1x8x8xbf16>, vector<1x8x8xbf16>, vector<1x8x8xf32> -> vector<1x8x8xf32>
    "tpu.trace_stop"() : () -> ()
    %268 = vector.broadcast %6 : vector<1x1x8xf32> to vector<1x8x8xf32>
    %269 = arith.addf %267, %268 : vector<1x8x8xf32>
    %cst_91 = arith.constant dense<0xFF800000> : vector<1x8xf32>
    %270 = vector.multi_reduction <maximumf>, %269, %cst_91 [2] : vector<1x8x8xf32> to vector<1x8xf32>
    %271 = vector.shape_cast %270 : vector<1x8xf32> to vector<1x8x1xf32>
    %272 = vector.broadcast %271 : vector<1x8x1xf32> to vector<1x8x8xf32>
    %273 = arith.subf %269, %272 : vector<1x8x8xf32>
    %274 = math.exp %273 : vector<1x8x8xf32>
    %cst_92 = arith.constant dense<0.000000e+00> : vector<1x8xf32>
    %275 = vector.multi_reduction <add>, %274, %cst_92 [2] : vector<1x8x8xf32> to vector<1x8xf32>
    %276 = vector.shape_cast %275 : vector<1x8xf32> to vector<1x8x1xf32>
    %277 = arith.truncf %274 : vector<1x8x8xf32> to vector<1x8x8xbf16>
    "tpu.trace_start"() <{level = 10 : i32, message = "bqk,bke->bqe"}> : () -> ()
    %cst_93 = arith.constant dense<0.000000e+00> : vector<1x8x8xf32>
    %278 = tpu.matmul %277, %266, %cst_93 {dimension_numbers = #tpu.dot_dimension_numbers<[2], [1], [1], [2], [0, 0, 0, 1, 1, 2], [0], [0]>} : vector<1x8x8xbf16>, vector<1x8x8xbf16>, vector<1x8x8xf32> -> vector<1x8x8xf32>
    "tpu.trace_stop"() : () -> ()
    %279 = tpu.reciprocal %276 {approx = true} : vector<1x8x1xf32> -> vector<1x8x1xf32>
    %280 = vector.broadcast %279 : vector<1x8x1xf32> to vector<1x8x8xf32>
    %281 = arith.mulf %278, %280 : vector<1x8x8xf32>
    %282 = vector.shape_cast %281 : vector<1x8x8xf32> to vector<8x8xf32>
    %283 = arith.truncf %282 : vector<8x8xf32> to vector<8x8xbf16>
    %c3_94 = arith.constant 3 : index
    %c0_95 = arith.constant 0 : index
    %c0_96 = arith.constant 0 : index
    %284 = vector.load %arg13[%c3_94, %c0_95, %c0_96] : memref<4x8x32xbf16, #tpu.memory_space<vmem>>, vector<1x8x32xbf16>
    %285 = vector.shape_cast %284 : vector<1x8x32xbf16> to vector<8x32xbf16>
    %cst_97 = arith.constant dense<0.000000e+00> : vector<8x32xf32>
    %286 = tpu.matmul %283, %285, %cst_97 {dimension_numbers = #tpu.dot_dimension_numbers<[1], [0], [0], [1], [0, 0, 1, 1], [], []>} : vector<8x8xbf16>, vector<8x32xbf16>, vector<8x32xf32> -> vector<8x32xf32>
    %287 = arith.addf %257, %286 : vector<8x32xf32>
    %288 = vector.broadcast %168 : vector<1x32xf32> to vector<8x32xf32>
    %289 = arith.addf %287, %288 : vector<8x32xf32>
    %290 = arith.addf %155, %289 : vector<8x32xf32>
    %291 = vector.extract_strided_slice %7 {offsets = [1, 0], sizes = [1, 32], strides = [1, 1]} : vector<3x32xf32> to vector<1x32xf32>
    %292 = vector.extract_strided_slice %8 {offsets = [1, 0], sizes = [1, 32], strides = [1, 1]} : vector<3x32xf32> to vector<1x32xf32>
    %cst_98 = arith.constant dense<0.000000e+00> : vector<8xf32>
    %293 = vector.multi_reduction <add>, %290, %cst_98 [1] : vector<8x32xf32> to vector<8xf32>
    %294 = vector.shape_cast %293 : vector<8xf32> to vector<8x1xf32>
    %cst_99 = arith.constant 3.200000e+01 : f32
    %295 = vector.broadcast %cst_99 : f32 to vector<8x1xf32>
    %296 = arith.divf %294, %295 : vector<8x1xf32>
    %297 = vector.broadcast %296 : vector<8x1xf32> to vector<8x32xf32>
    %298 = arith.subf %290, %297 : vector<8x32xf32>
    %299 = arith.mulf %298, %298 : vector<8x32xf32>
    %cst_100 = arith.constant dense<0.000000e+00> : vector<8xf32>
    %300 = vector.multi_reduction <add>, %299, %cst_100 [1] : vector<8x32xf32> to vector<8xf32>
    %301 = vector.shape_cast %300 : vector<8xf32> to vector<8x1xf32>
    %cst_101 = arith.constant 3.200000e+01 : f32
    %302 = vector.broadcast %cst_101 : f32 to vector<8x1xf32>
    %303 = arith.divf %301, %302 : vector<8x1xf32>
    %cst_102 = arith.constant 9.99999974E-6 : f32
    %304 = vector.broadcast %cst_102 : f32 to vector<8x1xf32>
    %305 = arith.addf %303, %304 : vector<8x1xf32>
    %306 = math.rsqrt %305 : vector<8x1xf32>
    %307 = vector.broadcast %306 : vector<8x1xf32> to vector<8x32xf32>
    %308 = arith.mulf %298, %307 : vector<8x32xf32>
    %309 = vector.broadcast %291 : vector<1x32xf32> to vector<8x32xf32>
    %310 = arith.mulf %308, %309 : vector<8x32xf32>
    %311 = vector.broadcast %292 : vector<1x32xf32> to vector<8x32xf32>
    %312 = arith.addf %310, %311 : vector<8x32xf32>
    %313 = arith.truncf %312 : vector<8x32xf32> to vector<8x32xbf16>
    %c0_103 = arith.constant 0 : index
    %c0_104 = arith.constant 0 : index
    %314 = vector.load %arg17[%c0_103, %c0_104] : memref<32x64xbf16, #tpu.memory_space<vmem>>, vector<32x64xbf16>
    %cst_105 = arith.constant dense<0.000000e+00> : vector<8x64xf32>
    %315 = tpu.matmul %313, %314, %cst_105 {dimension_numbers = #tpu.dot_dimension_numbers<[1], [0], [0], [1], [0, 0, 1, 1], [], []>} : vector<8x32xbf16>, vector<32x64xbf16>, vector<8x64xf32> -> vector<8x64xf32>
    %c0_106 = arith.constant 0 : index
    %c0_107 = arith.constant 0 : index
    %316 = vector.load %arg18[%c0_106, %c0_107] : memref<1x64xf32, #tpu.memory_space<vmem>>, vector<1x64xf32>
    %317 = vector.broadcast %316 : vector<1x64xf32> to vector<8x64xf32>
    %318 = arith.addf %315, %317 : vector<8x64xf32>
    %cst_108 = arith.constant 0.000000e+00 : f32
    %319 = vector.broadcast %cst_108 : f32 to vector<8x64xf32>
    %320 = arith.maximumf %318, %319 : vector<8x64xf32>
    %321 = arith.truncf %320 : vector<8x64xf32> to vector<8x64xbf16>
    %c0_109 = arith.constant 0 : index
    %c0_110 = arith.constant 0 : index
    %322 = vector.load %arg19[%c0_109, %c0_110] : memref<64x32xbf16, #tpu.memory_space<vmem>>, vector<64x32xbf16>
    %cst_111 = arith.constant dense<0.000000e+00> : vector<8x32xf32>
    %323 = tpu.matmul %321, %322, %cst_111 {dimension_numbers = #tpu.dot_dimension_numbers<[1], [0], [0], [1], [0, 0, 1, 1], [], []>} : vector<8x64xbf16>, vector<64x32xbf16>, vector<8x32xf32> -> vector<8x32xf32>
    %c0_112 = arith.constant 0 : index
    %c0_113 = arith.constant 0 : index
    %324 = vector.load %arg20[%c0_112, %c0_113] : memref<1x32xf32, #tpu.memory_space<vmem>>, vector<1x32xf32>
    %325 = vector.broadcast %324 : vector<1x32xf32> to vector<8x32xf32>
    %326 = arith.addf %323, %325 : vector<8x32xf32>
    %327 = arith.addf %312, %326 : vector<8x32xf32>
    %328 = vector.extract_strided_slice %7 {offsets = [2, 0], sizes = [1, 32], strides = [1, 1]} : vector<3x32xf32> to vector<1x32xf32>
    %329 = vector.extract_strided_slice %8 {offsets = [2, 0], sizes = [1, 32], strides = [1, 1]} : vector<3x32xf32> to vector<1x32xf32>
    %cst_114 = arith.constant dense<0.000000e+00> : vector<8xf32>
    %330 = vector.multi_reduction <add>, %327, %cst_114 [1] : vector<8x32xf32> to vector<8xf32>
    %331 = vector.shape_cast %330 : vector<8xf32> to vector<8x1xf32>
    %cst_115 = arith.constant 3.200000e+01 : f32
    %332 = vector.broadcast %cst_115 : f32 to vector<8x1xf32>
    %333 = arith.divf %331, %332 : vector<8x1xf32>
    %334 = vector.broadcast %333 : vector<8x1xf32> to vector<8x32xf32>
    %335 = arith.subf %327, %334 : vector<8x32xf32>
    %336 = arith.mulf %335, %335 : vector<8x32xf32>
    %cst_116 = arith.constant dense<0.000000e+00> : vector<8xf32>
    %337 = vector.multi_reduction <add>, %336, %cst_116 [1] : vector<8x32xf32> to vector<8xf32>
    %338 = vector.shape_cast %337 : vector<8xf32> to vector<8x1xf32>
    %cst_117 = arith.constant 3.200000e+01 : f32
    %339 = vector.broadcast %cst_117 : f32 to vector<8x1xf32>
    %340 = arith.divf %338, %339 : vector<8x1xf32>
    %cst_118 = arith.constant 9.99999974E-6 : f32
    %341 = vector.broadcast %cst_118 : f32 to vector<8x1xf32>
    %342 = arith.addf %340, %341 : vector<8x1xf32>
    %343 = math.rsqrt %342 : vector<8x1xf32>
    %344 = vector.broadcast %343 : vector<8x1xf32> to vector<8x32xf32>
    %345 = arith.mulf %335, %344 : vector<8x32xf32>
    %346 = vector.broadcast %328 : vector<1x32xf32> to vector<8x32xf32>
    %347 = arith.mulf %345, %346 : vector<8x32xf32>
    %348 = vector.broadcast %329 : vector<1x32xf32> to vector<8x32xf32>
    %349 = arith.addf %347, %348 : vector<8x32xf32>
    %350 = vector.shape_cast %349 : vector<8x32xf32> to vector<1x8x32xf32>
    %c0_119 = arith.constant 0 : index
    %c0_120 = arith.constant 0 : index
    %c0_121 = arith.constant 0 : index
    %351 = vector.load %arg21[%c0_119, %c0_120, %c0_121] : memref<1x8x32xf32, #tpu.memory_space<vmem>>, vector<1x8x32xf32>
    tpu.vector_store %arg21[%c0_119, %c0_120, %c0_121], %350 {strides = array<i32>} : memref<1x8x32xf32, #tpu.memory_space<vmem>>, vector<1x8x32xf32>,
    return
  }
  func.func @transform_0(%arg0: i32) -> (i32, i32, i32) {
    %c0_i32 = arith.constant 0 : i32
    %c0_i32_0 = arith.constant 0 : i32
    %c0_i32_1 = arith.constant 0 : i32
    return %arg0, %c0_i32, %c0_i32_0 : i32, i32, i32
  }
  func.func @transform_1(%arg0: i32) -> (i32, i32, i32) {
    %c0_i32 = arith.constant 0 : i32
    %c0_i32_0 = arith.constant 0 : i32
    %c0_i32_1 = arith.constant 0 : i32
    return %arg0, %c0_i32, %c0_i32_0 : i32, i32, i32
  }
  func.func @transform_2(%arg0: i32) -> (i32, i32, i32) {
    %c0_i32 = arith.constant 0 : i32
    %c0_i32_0 = arith.constant 0 : i32
    %c0_i32_1 = arith.constant 0 : i32
    return %arg0, %c0_i32, %c0_i32_0 : i32, i32, i32
  }
  func.func @transform_3(%arg0: i32) -> (i32, i32) {
    %c0_i32 = arith.constant 0 : i32
    %c0_i32_0 = arith.constant 0 : i32
    %c0_i32_1 = arith.constant 0 : i32
    return %c0_i32, %c0_i32_0 : i32, i32
  }
  func.func @transform_4(%arg0: i32) -> (i32, i32) {
    %c0_i32 = arith.constant 0 : i32
    %c0_i32_0 = arith.constant 0 : i32
    %c0_i32_1 = arith.constant 0 : i32
    return %c0_i32, %c0_i32_0 : i32, i32
  }
  func.func @transform_5(%arg0: i32) -> (i32, i32) {
    %c0_i32 = arith.constant 0 : i32
    %c0_i32_0 = arith.constant 0 : i32
    %c0_i32_1 = arith.constant 0 : i32
    return %c0_i32, %c0_i32_0 : i32, i32
  }
  func.func @transform_6(%arg0: i32) -> (i32, i32, i32) {
    %c0_i32 = arith.constant 0 : i32
    %c0_i32_0 = arith.constant 0 : i32
    %c0_i32_1 = arith.constant 0 : i32
    %c0_i32_2 = arith.constant 0 : i32
    return %c0_i32, %c0_i32_0, %c0_i32_1 : i32, i32, i32
  }
  func.func @transform_7(%arg0: i32) -> (i32, i32) {
    %c0_i32 = arith.constant 0 : i32
    %c0_i32_0 = arith.constant 0 : i32
    %c0_i32_1 = arith.constant 0 : i32
    return %c0_i32, %c0_i32_0 : i32, i32
  }
  func.func @transform_8(%arg0: i32) -> (i32, i32) {
    %c0_i32 = arith.constant 0 : i32
    %c0_i32_0 = arith.constant 0 : i32
    %c0_i32_1 = arith.constant 0 : i32
    return %c0_i32, %c0_i32_0 : i32, i32
  }
  func.func @transform_9(%arg0: i32) -> (i32, i32) {
    %c0_i32 = arith.constant 0 : i32
    %c0_i32_0 = arith.constant 0 : i32
    %c0_i32_1 = arith.constant 0 : i32
    return %c0_i32, %c0_i32_0 : i32, i32
  }
  func.func @transform_10(%arg0: i32) -> (i32, i32) {
    %c0_i32 = arith.constant 0 : i32
    %c0_i32_0 = arith.constant 0 : i32
    %c0_i32_1 = arith.constant 0 : i32
    return %c0_i32, %c0_i32_0 : i32, i32
  }
  func.func @transform_11(%arg0: i32) -> (i32, i32) {
    %c0_i32 = arith.constant 0 : i32
    %c0_i32_0 = arith.constant 0 : i32
    %c0_i32_1 = arith.constant 0 : i32
    return %c0_i32, %c0_i32_0 : i32, i32
  }
  func.func @transform_12(%arg0: i32) -> (i32, i32, i32) {
    %c0_i32 = arith.constant 0 : i32
    %c0_i32_0 = arith.constant 0 : i32
    %c0_i32_1 = arith.constant 0 : i32
    %c0_i32_2 = arith.constant 0 : i32
    return %c0_i32, %c0_i32_0, %c0_i32_1 : i32, i32, i32
  }
  func.func @transform_13(%arg0: i32) -> (i32, i32) {
    %c0_i32 = arith.constant 0 : i32
    %c0_i32_0 = arith.constant 0 : i32
    %c0_i32_1 = arith.constant 0 : i32
    return %c0_i32, %c0_i32_0 : i32, i32
  }
  func.func @transform_14(%arg0: i32) -> (i32, i32) {
    %c0_i32 = arith.constant 0 : i32
    %c0_i32_0 = arith.constant 0 : i32
    %c0_i32_1 = arith.constant 0 : i32
    return %c0_i32, %c0_i32_0 : i32, i32
  }
  func.func @transform_15(%arg0: i32) -> (i32, i32) {
    %c0_i32 = arith.constant 0 : i32
    %c0_i32_0 = arith.constant 0 : i32
    %c0_i32_1 = arith.constant 0 : i32
    return %c0_i32, %c0_i32_0 : i32, i32
  }
  func.func @transform_16(%arg0: i32) -> (i32, i32) {
    %c0_i32 = arith.constant 0 : i32
    %c0_i32_0 = arith.constant 0 : i32
    %c0_i32_1 = arith.constant 0 : i32
    return %c0_i32, %c0_i32_0 : i32, i32
  }
  func.func @transform_17(%arg0: i32) -> (i32, i32) {
    %c0_i32 = arith.constant 0 : i32
    %c0_i32_0 = arith.constant 0 : i32
    %c0_i32_1 = arith.constant 0 : i32
    return %c0_i32, %c0_i32_0 : i32, i32
  }
  func.func @transform_18(%arg0: i32) -> (i32, i32) {
    %c0_i32 = arith.constant 0 : i32
    %c0_i32_0 = arith.constant 0 : i32
    %c0_i32_1 = arith.constant 0 : i32
    return %c0_i32, %c0_i32_0 : i32, i32
  }
  func.func @transform_19(%arg0: i32) -> (i32, i32) {
    %c0_i32 = arith.constant 0 : i32
    %c0_i32_0 = arith.constant 0 : i32
    %c0_i32_1 = arith.constant 0 : i32
    return %c0_i32, %c0_i32_0 : i32, i32
  }
  func.func @transform_20(%arg0: i32) -> (i32, i32, i32) {
    %c0_i32 = arith.constant 0 : i32
    %c0_i32_0 = arith.constant 0 : i32
    %c0_i32_1 = arith.constant 0 : i32
    return %arg0, %c0_i32, %c0_i32_0 : i32, i32, i32
  }
}

</mosaic_0001>

<bundles_post_ra>
// kernel: tpu_custom_call.1
= control target key start
LH: loop header
LB: loop body
LE: loop exit
PB: predicated region body
PF: predicated region fallthrough
CT: control target
= control target key end

     0   :  { %7 = vsyncpa [#allocation3], 0  ;;  %s692_s0 = inlined_call_operand.hbm [shape: f32[8,128], index: 0, kind: input, shape index: {}]   ;;  %s693_s1 = inlined_call_operand.hbm [shape: f32[2,8,128], index: 1, kind: input, shape index: {}]   ;;  %s694_s2 = inlined_call_operand.hbm [shape: f32[2,8,128], index: 2, kind: output, shape index: {}]  }
   0x1   :  { %8 = vsyncpa [#allocation6], 0 }
   0x2   :  { %10 = vsyncpa [#allocation6 + $0x1], 0 }
   0x3   :  { %11 = vsyncpa [#allocation4], 0 }
   0x4   :  { %13 = vsyncpa [#allocation4 + $0x1], 0  ;;  %s491_s9 = smov 0   ;;  %s493_s10 = smov 0  }
   0x5   :  { %s495_s11 = smov 0   ;;  %s497_s12 = smov 0  }
   0x6 LB: > { %s512_s13 = sadd.s32 4294967295, %s471_s12   ;;  %s272_s14 = sadd.s32 4294967294, %s471_s12   ;;  %s471_s12 = sphi %s497_s12, %s718_s12   ;;  %s467_s11 = sphi %s495_s11, %s717_s11   ;;  %s463_s10 = sphi %s493_s10, %s716_s10   ;;  %s459_s9 = sphi %s491_s9, %s715_s9  }
   0x7   : > { %p60_p0 = scmp.ne.s32.totalorder %s463_s10, %s459_s9  ;;  %p695_p1 = scmp.eq.s32.totalorder %s512_s13, 0 }
   0x8   : > { %p90_p3 = scmp.eq.s32.totalorder %s272_s14, 1  ;;  %p273_p5 = scmp.ge.s32.totalorder %s471_s12, 1 }
   0x9   : > { %p521_p4 = por %p695_p1, %p60_p0  ;;  %p97_p7 = scmp.lt.s32.totalorder %s471_s12, 3 }
   0xa   : > { %p526_p6 = por %p90_p3, %p60_p0  ;;  %s473_s18 = smov [#allocation2]  }
   0xb   : > { %s698_s15 = scalar_select %p521_p4, 1, 0 }
   0xc   : > { %s699_s16 = scalar_select %p526_p6, 1, 0 }
   0xd   : > { %p531_p8 = pnand %p273_p5, %p97_p7  ;;  %s110_s19 = sshll.u32 %s473_s18, 4  ;;  %s111_s19 = int_to_ptr.vmem [resolvable:$true] %s110_s19 }
   0xe   : > { %s539_s20 = sadd.s32 1, %s471_s12   ;;  %s47_s24 = sadd.s32 1, %s467_s11 }
   0xf   : > { %s700_s17 = scalar_select %p531_p8, 1, 0 }
  0x10   : > { %p294_p10 = pneg %p531_p8  ;;  %s44_s22 = ssub.s32 %s471_s12, %s539_s20 }
  0x11   : > { %p549_p12 = scmp.eq.s32.totalorder %s44_s22, 0  ;;  %s343_s27 = scalar_lea.hbm %s692_s0, 128 }
  0x12   : > { %p543_p11 = pnand %p294_p10, %p695_p1  ;;  %p344_p0 = scmp.ne.s32.totalorder %s692_s0, %s343_s27 }
  0x13   : > { %s702_s23 = scalar_select %p549_p12, 1, 0 }
  0x14   : > { %p345_p3 = pneg %p543_p11  ;;  %p350_p10 = scmp.lt.u32.totalorder %s343_s27, %s692_s0 }
  0x16   : > { %p346_p5 = pnand %p345_p3, %p344_p0 }
  0x18   : > { %p347_p7 = pneg %p346_p5 }
  0x1a   : > { %p352_p9 = pnand %p350_p10, %p347_p7 }
  0x1c   : > { %355 = shalt.err (!%p352_p9)
}
  0x1d   : > { %s356_s4 = scalar_lea.vmem %s111_s19, 128  ;;  %p364_p6 = scmp.lt.s32.totalorder %s111_s19, %s111_s19 }
  0x1e   : > { %p357_p1 = scmp.ne.s32.totalorder %s111_s19, %s356_s4  ;;  %p365_p4 = scmp.lt.s32.totalorder %s356_s4, %s356_s4 }
  0x20   : > { %p359_p2 = pnand %p357_p1, %p345_p3  ;;  %p366_p8 = por %p365_p4, %p364_p6 }
  0x22   : > { %p360_p13 = pneg %p359_p2 }
  0x24   : > { %p367_p12 = pnand %p366_p8, %p360_p13 }
  0x26   : > { %370 = shalt.err (!%p367_p12)
}
  0x27   : > { %297 = dma.hbm_to_vmem [thread:$0]  (!%p543_p11), %s692_s0, 128, %s111_s19, [#allocation3]  }
  0x28   : > { %p703_p1 = scmp.ne.s32.totalorder %s702_s23, 0  ;;  %p55_p2 = scmp.eq.s32.totalorder %s471_s12, 0 }
  0x29   : > { %p704_p4 = scmp.ne.s32.totalorder %s467_s11, %s463_s10  ;;  %p705_p6 = scmp.eq.s32.totalorder %s512_s13, 1 }
  0x2a   : > { %s575_s7 = scalar_select %p703_p1, %s467_s11, %s47_s24  }
  0x2b   : > { %p583_p8 = por %p705_p6, %p704_p4  ;;  %p307_p9 = scmp.lt.s32.totalorder %s471_s12, 2 }
  0x2c   : > { %s121_s14 = sand.u32 1, %s467_s11   ;;  %p707_p12 = pmov %p704_p4 }
  0x2d   : > { %s276_s18 = sshll.u32 %s121_s14, 3  ;;  %s277_s21 = sshll.u32 %s471_s12, 7 }
  0x2e   : > { %p56_p13 = por %p55_p2, %p707_p12  ;;  %s596_s19 = scalar_lea.hbm %s693_s1, %s277_s21 }
  0x2f   : > { %s125_s23 = scalar_lea.vmem [#allocation5], %s276_s18  ;;  %s122_s27 = scalar_lea.sflag [#allocation6], %s121_s14 }
  0x30   : > { %s132_s24 = sshll.u32 %s125_s23, 4  ;;  %p598_p11 = pnand %p307_p9, %p56_p13  ;;  %s602_s24 = int_to_ptr.vmem [resolvable:$true] %s132_s24 }
  0x31   : > { %s371_s28 = scalar_lea.hbm %s596_s19, 128  ;;  %s376_s3 = scalar_lea.hbm %s693_s1, 256 }
  0x32   : > { %p372_p0 = scmp.ne.s32.totalorder %s596_s19, %s371_s28  ;;  %p373_p3 = pneg %p598_p11 }
  0x33   : > { %p377_p10 = scmp.lt.u32.totalorder %s596_s19, %s693_s1  ;;  %p378_p1 = scmp.lt.u32.totalorder %s376_s3, %s371_s28 }
  0x34   : > { %p374_p5 = pnand %p373_p3, %p372_p0  ;;  %p380_p4 = scmp.lt.u32.totalorder %s371_s28, %s596_s19 }
  0x35   : > { %p379_p2 = por %p378_p1, %p377_p10 }
  0x36   : > { %p375_p7 = pneg %p374_p5 }
  0x37   : > { %p381_p6 = por %p380_p4, %p379_p2 }
  0x39   : > { %p382_p9 = pnand %p381_p6, %p375_p7 }
  0x3b   : > { %385 = shalt.err (!%p382_p9)
}
  0x3c   : > { %s386_s6 = scalar_lea.vmem %s602_s24, 128  ;;  %s474_s14 = smov [#allocation5]  }
  0x3d   : > { %p387_p12 = scmp.ne.s32.totalorder %s602_s24, %s386_s6  ;;  %s391_s18 = sshll.u32 %s474_s14, 4  ;;  %s392_s18 = int_to_ptr.vmem [resolvable:$false] %s391_s18 }
  0x3e   : > { %s393_s21 = scalar_lea.vmem %s392_s18, 256  ;;  %p394_p5 = scmp.lt.s32.totalorder %s602_s24, %s392_s18 }
  0x3f   : > { %p389_p13 = pnand %p387_p12, %p373_p3  ;;  %p395_p10 = scmp.lt.s32.totalorder %s393_s21, %s386_s6 }
  0x41   : > { %p390_p0 = pneg %p389_p13  ;;  %p396_p1 = por %p395_p10, %p394_p5 }
  0x43   : > { %p397_p2 = pnand %p396_p1, %p390_p0 }
  0x45   : > { %400 = shalt.err (!%p397_p2)
}
  0x46   : > { %301 = dma.hbm_to_vmem [thread:$0]  (!%p598_p11), %s596_s19, 128, %s602_s24, %s122_s27  }
  0x47   : > { %p709_p7 = scmp.ne.s32.totalorder %s700_s17, 0 }
  0x48   : > { %p710_p3 = scmp.eq.s32.totalorder (!%p709_p7), %s512_s13, 0 }
  0x49   : > { %141 = sbr.rel (%p709_p7) target bundleno = 110 (0x6e), region = 28 }
  0x50   : > { %446 = dma.done.wait (%p710_p3), [#allocation3], 128   ;;  %p711_p4 = pmov %p710_p3 }
  0x51   : > { %s636_s22 = sand.u32 1, %s463_s10   ;;  %p712_p6 = scmp.ne.s32.totalorder %s698_s15, 0 }
  0x52   : > { %448 = vsyncadd (%p711_p4), [#allocation3], 4294967168  ;;  %s280_s25 = sshll.u32 %s636_s22, 3  ;;  %s148_s23 = scalar_lea.sflag [#allocation6], %s636_s22 }
  0x53   : > { %s151_s26 = scalar_lea.vmem [#allocation5], %s280_s25 }
  0x54   : > { %450 = dma.done.wait (%p712_p6), %s148_s23, 128  }
  0x55   : > { %452 = vsyncadd (%p712_p6), %s148_s23, 4294967168  ;;  %s171_s17 = scalar_lea.vmem [#allocation7], %s280_s25  ;;  %s283_s24 = sshll.u32 %s512_s13, 7  ;;  %v172_v0 = vld [vmem:[%s151_s26] sm:$0xff]  ;;  %v173_v1 = vld [vmem:[#allocation2] sm:$0xff] }
  0x56   : > { %s190_s19 = sshll.u32 %s171_s17, 4  ;;  %v174_v2 = vadd.f32 %v173_v1, %v172_v0  ;;  %s650_s29 = scalar_lea.hbm %s694_s2, %s283_s24  ;;  %s645_s19 = int_to_ptr.vmem [resolvable:$true] %s190_s19 }
  0x57   : > { %s177_s15 = scalar_lea.sflag [#allocation4], %s636_s22  ;;  %s401_s30 = scalar_lea.vmem %s645_s19, 128 }
  0x58   : > { %175 = vst [vmem:[%s171_s17] sm:$0xff] %v174_v2  ;;  %p402_p11 = scmp.ne.s32.totalorder %s645_s19, %s401_s30  ;;  %s475_s13 = smov [#allocation7]  }
  0x59   : > { %s405_s3 = sshll.u32 %s475_s13, 4  ;;  %s406_s3 = int_to_ptr.vmem [resolvable:$false] %s405_s3 }
  0x5a   : > { %p403_p9 = pnand %p402_p11, %p583_p8  ;;  %s407_s4 = scalar_lea.vmem %s406_s3, 256 }
  0x5b   : > { %p408_p13 = scmp.lt.s32.totalorder %s645_s19, %s406_s3  ;;  %p409_p0 = scmp.lt.s32.totalorder %s407_s4, %s401_s30 }
  0x5c   : > { %p404_p12 = pneg %p403_p9 }
  0x5d   : > { %p410_p5 = por %p409_p0, %p408_p13 }
  0x5f   : > { %p411_p10 = pnand %p410_p5, %p404_p12 }
  0x61   : > { %414 = shalt.err (!%p411_p10)
}
  0x62   : > { %s415_s5 = scalar_lea.hbm %s650_s29, 128  ;;  %s419_s18 = scalar_lea.hbm %s694_s2, 256 }
  0x63   : > { %p416_p1 = scmp.ne.s32.totalorder %s650_s29, %s415_s5  ;;  %p420_p3 = scmp.lt.u32.totalorder %s650_s29, %s694_s2 }
  0x64   : > { %p421_p4 = scmp.lt.u32.totalorder %s419_s18, %s415_s5  ;;  %p423_p11 = scmp.lt.u32.totalorder %s415_s5, %s650_s29 }
  0x65   : > { %p417_p2 = pnand %p416_p1, %p583_p8 }
  0x66   : > { %p422_p6 = por %p421_p4, %p420_p3 }
  0x67   : > { %p418_p7 = pneg %p417_p2 }
  0x68   : > { %p424_p9 = por %p423_p11, %p422_p6 }
  0x6a   : > { %p425_p12 = pnand %p424_p9, %p418_p7 }
  0x6c   : > { %428 = shalt.err (!%p425_p12)
}
  0x6d   : > { %292 = dma.vmem_to_hbm [thread:$0]  (%p583_p8), %s645_s19, 128, %s650_s29, %s177_s15  }
  0x6e PF: > { %s202_s25 = sand.u32 1, %s459_s9   ;;  %p713_p13 = scmp.ne.s32.totalorder %s699_s16, 0 }
  0x6f   : > { %p714_p0 = scmp.ge.s32.totalorder %s471_s12, 2  ;;  %s203_s23 = scalar_lea.sflag [#allocation4], %s202_s25 }
  0x71   : > { %p303_p5 = pnand %p714_p0, %p713_p13 }
  0x73   : > { %454 = dma.done.wait (!%p303_p5), %s203_s23, 128  }
  0x74   : > { %456 = vsyncadd (!%p303_p5), %s203_s23, 4294967168  ;;  %p16_p10 = scmp.ge.s32.totalorder %s539_s20, 4   ;;  %s715_s9 = smov %s463_s10 }
  0x75   : > { %s716_s10 = smov %s467_s11  ;;  %s717_s11 = smov %s575_s7 }
  0x76   : > { %s718_s12 = smov %s539_s20  ;;  %18 = sbr.rel (!%p16_p10) target bundleno = 6 (0x6), region = 78 }
  0x7d   :  { %208 = vsyncpa [#allocation3], 1 }
  0x7e   :  { %210 = vsyncpa [#allocation3 + $0x1], 1 }
  0x7f   :  { %211 = vsyncpa [#allocation6], 1 }
  0x80   :  { %213 = vsyncpa [#allocation6 + $0x1], 1 }
  0x81   :  { %214 = vsyncpa [#allocation4], 1 }
  0x82   :  { %216 = vsyncpa [#allocation4 + $0x1], 1 }

// kernel: tpu_custom_call.1
= control target key start
LH: loop header
LB: loop body
LE: loop exit
PB: predicated region body
PF: predicated region fallthrough
CT: control target
= control target key end

     0   :  { %s4451_s0 = inlined_call_operand.vmem [shape: f32[2,8,32], index: 0, kind: input, shape index: {}]   ;;  %s4452_s1 = inlined_call_operand.vmem [shape: f32[2,8,32], index: 1, kind: input, shape index: {}]   ;;  %s4453_s2 = inlined_call_operand.hbm [shape: f32[2,1,8], index: 2, kind: input, shape index: {}]   ;;  %s4454_s3 = inlined_call_operand.hbm [shape: f32[8,8], index: 3, kind: input, shape index: {}]   ;;  %s4455_s4 = inlined_call_operand.vmem [shape: bf16[32,96], index: 4, kind: input, shape index: {}]   ;;  %s4456_s5 = inlined_call_operand.hbm [shape: f32[1,96], index: 5, kind: input, shape index: {}]   ;;  %s4457_s6 = inlined_call_operand.hbm [shape: bf16[4,8,32], index: 6, kind: input, shape index: {}]   ;;  %s4458_s7 = inlined_call_operand.hbm [shape: f32[1,32], index: 7, kind: input, shape index: {}]   ;;  %s4459_s8 = inlined_call_operand.hbm [shape: bf16[32,32], index: 8, kind: input, shape index: {}]   ;;  %s4460_s9 = inlined_call_operand.hbm [shape: f32[1,32], index: 9, kind: input, shape index: {}]   ;;  %s4461_s10 = inlined_call_operand.vmem [shape: bf16[32,64], index: 10, kind: input, shape index: {}]   ;;  %s4462_s11 = inlined_call_operand.hbm [shape: f32[1,64], index: 11, kind: input, shape index: {}]   ;;  %s4463_s12 = inlined_call_operand.hbm [shape: bf16[4,8,32], index: 12, kind: input, shape index: {}]   ;;  %s4464_s13 = inlined_call_operand.hbm [shape: f32[1,32], index: 13, kind: input, shape index: {}]   ;;  %s4465_s14 = inlined_call_operand.vmem [shape: f32[3,32], index: 14, kind: input, shape index: {}]   ;;  %s4466_s15 = inlined_call_operand.vmem [shape: f32[3,32], index: 15, kind: input, shape index: {}]   ;;  %s4467_s16 = inlined_call_operand.vmem [shape: bf16[32,64], index: 16, kind: input, shape index: {}]   ;;  %s4468_s17 = inlined_call_operand.vmem [shape: f32[1,64], index: 17, kind: input, shape index: {}]   ;;  %s4469_s18 = inlined_call_operand.vmem [shape: bf16[64,32], index: 18, kind: input, shape index: {}]   ;;  %s4470_s19 = inlined_call_operand.vmem [shape: f32[1,32], index: 19, kind: input, shape index: {}]   ;;  %s4471_s20 = inlined_call_operand.hbm [shape: f32[2,8,32], index: 20, kind: output, shape index: {}]  }
   0x1   :  { %4492 = sst [smem:[#allocation27_spill]] %s4451_s0 }
   0x2   :  { %4493 = sst [smem:[#allocation28_spill]] %s4452_s1 }
   0x3   :  { %4494 = sst [smem:[#allocation29_spill]] %s4453_s2 }
   0x4   :  { %4495 = sst [smem:[#allocation30_spill]] %s4454_s3 }
   0x5   :  { %4496 = sst [smem:[#allocation31_spill]] %s4455_s4 }
   0x6   :  { %4497 = sst [smem:[#allocation32_spill]] %s4457_s6 }
   0x7   :  { %4498 = sst [smem:[#allocation33_spill]] %s4465_s14 }
   0x8   :  { %4499 = sst [smem:[#allocation34_spill]] %s4466_s15 }
   0x9   :  { %4500 = sst [smem:[#allocation35_spill]] %s4467_s16 }
   0xa   :  { %4501 = sst [smem:[#allocation36_spill]] %s4468_s17 }
   0xb   :  { %4502 = sst [smem:[#allocation37_spill]] %s4469_s18 }
   0xc   :  { %4503 = sst [smem:[#allocation38_spill]] %s4470_s19 }
   0xd   :  { %4504 = sst [smem:[#allocation39_spill]] %s4471_s20 }
   0xe   :  { %25 = vsyncpa [#allocation3], 0 }
   0xf   :  { %27 = vsyncpa [#allocation3 + $0x1], 0 }
  0x10   :  { %28 = vsyncpa [#allocation6], 0 }
  0x11   :  { %29 = vsyncpa [#allocation9], 0 }
  0x12   :  { %30 = vsyncpa [#allocation12], 0 }
  0x13   :  { %31 = vsyncpa [#allocation15], 0 }
  0x14   :  { %32 = vsyncpa [#allocation18], 0 }
  0x15   :  { %33 = vsyncpa [#allocation4], 0 }
  0x16   :  { %35 = vsyncpa [#allocation4 + $0x1], 0  ;;  %s3754_s1 = smov 0   ;;  %s3756_s22 = smov 0  }
  0x17   :  { %s3758_s23 = smov 0   ;;  %s3760_s24 = smov 0  }
  0x18 LB: > { %s3623_s2 = smov [#allocation5]   ;;  %s3775_s3 = sadd.s32 4294967295, %s3621_s24   ;;  %s3621_s24 = sphi %s3760_s24, %s4550_s24   ;;  %s3617_s23 = sphi %s3758_s23, %s4549_s23   ;;  %s3613_s22 = sphi %s3756_s22, %s4548_s22   ;;  %s3609_s1 = sphi %s3754_s1, %s4547_s1  }
  0x19   : > { %s520_s25 = sshll.u32 %s3623_s2, 4  ;;  %p2720_p0 = scmp.ge.s32.totalorder %s3621_s24, 1  ;;  %s521_s25 = int_to_ptr.vmem [resolvable:$true] %s520_s25 }
  0x1a   : > { %p4477_p1 = scmp.eq.s32.totalorder %s3775_s3, 0  ;;  %p507_p2 = scmp.lt.s32.totalorder %s3621_s24, 3 }
  0x1b   : > { %s3624_s27 = smov [#allocation8]   ;;  %s3625_s29 = smov [#allocation11]  }
  0x1c   : > { %p3780_p3 = pnand %p2720_p0, %p507_p2  ;;  %s544_s28 = sshll.u32 %s3624_s27, 4  ;;  %s3787_s28 = int_to_ptr.vmem [resolvable:$true] %s544_s28 }
  0x1d   : > { %s568_s30 = sshll.u32 %s3625_s29, 4  ;;  %s4507_s2 = sld [smem:[#allocation30_spill]]  ;;  %s3795_s30 = int_to_ptr.vmem [resolvable:$true] %s568_s30 }
  0x1e   : > { %s4505_s26 = scalar_select %p3780_p3, 1, 0 }
  0x1f   : > { %p3091_p5 = pneg %p3780_p3 }
  0x21   : > { %p3791_p6 = pnand %p3091_p5, %p4477_p1 }
  0x23   : > { %s3253_s20 = scalar_lea.hbm %s4507_s2, 128  ;;  %p3805_p8 = pneg %p3791_p6 }
  0x24   : > { %p3254_p7 = scmp.ne.s32.totalorder %s4507_s2, %s3253_s20  ;;  %p3260_p11 = scmp.lt.u32.totalorder %s3253_s20, %s4507_s2 }
  0x26   : > { %p3256_p9 = pnand %p3805_p8, %p3254_p7 }
  0x28   : > { %p3257_p10 = pneg %p3256_p9 }
  0x2a   : > { %p3262_p12 = pnand %p3260_p11, %p3257_p10 }
  0x2c   : > { %3265 = shalt.err (!%p3262_p12)
}
  0x2d   : > { %s3266_s0 = scalar_lea.vmem %s521_s25, 128  ;;  %p3274_p5 = scmp.lt.s32.totalorder %s521_s25, %s521_s25 }
  0x2e   : > { %p3267_p13 = scmp.ne.s32.totalorder %s521_s25, %s3266_s0  ;;  %p3275_p4 = scmp.lt.s32.totalorder %s3266_s0, %s3266_s0 }
  0x30   : > { %p3269_p0 = pnand %p3267_p13, %p3805_p8  ;;  %p3276_p1 = por %p3275_p4, %p3274_p5 }
  0x32   : > { %p3270_p2 = pneg %p3269_p0 }
  0x34   : > { %p3277_p3 = pnand %p3276_p1, %p3270_p2 }
  0x36   : > { %3280 = shalt.err (!%p3277_p3)
}
  0x37   : > { %3094 = dma.hbm_to_vmem [thread:$0]  (!%p3791_p6), %s4507_s2, 128, %s521_s25, [#allocation6]  }
  0x38   : > { %s4509_s6 = sld [smem:[#allocation32_spill]] }
  0x3e   : > { %s3281_s21 = scalar_lea.hbm %s4509_s6, 256 }
  0x3f   : > { %p3282_p7 = scmp.ne.s32.totalorder %s4509_s6, %s3281_s21  ;;  %p3288_p1 = scmp.lt.u32.totalorder %s3281_s21, %s4509_s6 }
  0x41   : > { %p3284_p9 = pnand %p3282_p7, %p3805_p8 }
  0x43   : > { %p3285_p4 = pneg %p3284_p9 }
  0x45   : > { %p3290_p3 = pnand %p3288_p1, %p3285_p4 }
  0x47   : > { %3293 = shalt.err (!%p3290_p3)
}
  0x48   : > { %s3294_s25 = scalar_lea.vmem %s3787_s28, 256  ;;  %p3302_p13 = scmp.lt.s32.totalorder %s3787_s28, %s3787_s28 }
  0x49   : > { %p3295_p10 = scmp.ne.s32.totalorder %s3787_s28, %s3294_s25  ;;  %p3303_p0 = scmp.lt.s32.totalorder %s3294_s25, %s3294_s25 }
  0x4b   : > { %p3297_p11 = pnand %p3295_p10, %p3805_p8  ;;  %p3304_p2 = por %p3303_p0, %p3302_p13 }
  0x4d   : > { %p3298_p12 = pneg %p3297_p11 }
  0x4f   : > { %p3305_p5 = pnand %p3304_p2, %p3298_p12 }
  0x51   : > { %3308 = shalt.err (!%p3305_p5)
}
  0x52   : > { %s3626_s16 = smov 64   ;;  %s3627_s15 = smov 4  }
  0x53   : > { %3100 = dma.hbm_to_vmem [thread:$0]  (!%p3791_p6), %s4509_s6, 256, %s3787_s28, [#allocation9], %s3626_s16, %s3626_s16, %s3627_s15  }
  0x54   : > { %s3309_s21 = scalar_lea.hbm %s4459_s8, 256 }
  0x55   : > { %p3310_p7 = scmp.ne.s32.totalorder %s4459_s8, %s3309_s21  ;;  %p3316_p1 = scmp.lt.u32.totalorder %s3309_s21, %s4459_s8 }
  0x57   : > { %p3312_p9 = pnand %p3310_p7, %p3805_p8 }
  0x59   : > { %p3313_p4 = pneg %p3312_p9 }
  0x5b   : > { %p3318_p3 = pnand %p3316_p1, %p3313_p4 }
  0x5d   : > { %3321 = shalt.err (!%p3318_p3)
}
  0x5e   : > { %s3322_s28 = scalar_lea.vmem %s3795_s30, 256  ;;  %p3330_p13 = scmp.lt.s32.totalorder %s3795_s30, %s3795_s30 }
  0x5f   : > { %p3323_p10 = scmp.ne.s32.totalorder %s3795_s30, %s3322_s28  ;;  %p3331_p0 = scmp.lt.s32.totalorder %s3322_s28, %s3322_s28 }
  0x61   : > { %p3325_p11 = pnand %p3323_p10, %p3805_p8  ;;  %p3332_p2 = por %p3331_p0, %p3330_p13 }
  0x63   : > { %p3326_p12 = pneg %p3325_p11 }
  0x65   : > { %p3333_p5 = pnand %p3332_p2, %p3326_p12 }
  0x67   : > { %3336 = shalt.err (!%p3333_p5)
}
  0x68   : > { %3106 = dma.hbm_to_vmem [thread:$0]  (!%p3791_p6), %s4459_s8, 256, %s3795_s30, [#allocation12], %s3626_s16, %s3626_s16, %s3627_s15  }
  0x69   : > { %s3628_s19 = smov [#allocation14]   ;;  %s3629_s20 = smov [#allocation7]  }
  0x6a   : > { %s596_s18 = sshll.u32 %s3628_s19, 4  ;;  %s534_s21 = sshll.u32 %s3629_s20, 4  ;;  %s597_s18 = int_to_ptr.vmem [resolvable:$true] %s596_s18  ;;  %s535_s21 = int_to_ptr.vmem [resolvable:$true] %s534_s21 }
  0x6b   : > { %s3337_s25 = scalar_lea.hbm %s4462_s11, 16 }
  0x6c   : > { %p3338_p7 = scmp.ne.s32.totalorder %s4462_s11, %s3337_s25  ;;  %p3344_p1 = scmp.lt.u32.totalorder %s3337_s25, %s4462_s11 }
  0x6e   : > { %p3340_p9 = pnand %p3338_p7, %p3805_p8 }
  0x70   : > { %p3341_p4 = pneg %p3340_p9 }
  0x72   : > { %p3346_p3 = pnand %p3344_p1, %p3341_p4 }
  0x74   : > { %3349 = shalt.err (!%p3346_p3)
}
  0x75   : > { %s3350_s30 = scalar_lea.vmem %s597_s18, 16  ;;  %s3357_s17 = scalar_lea.vmem %s597_s18, 32 }
  0x76   : > { %p3351_p10 = scmp.ne.s32.totalorder %s597_s18, %s3350_s30  ;;  %p3358_p13 = scmp.lt.s32.totalorder %s597_s18, %s597_s18 }
  0x77   : > { %p3359_p0 = scmp.lt.s32.totalorder %s3357_s17, %s3350_s30 }
  0x78   : > { %p3353_p11 = pnand %p3351_p10, %p3805_p8 }
  0x79   : > { %p3360_p2 = por %p3359_p0, %p3358_p13 }
  0x7a   : > { %p3354_p12 = pneg %p3353_p11 }
  0x7c   : > { %p3361_p5 = pnand %p3360_p2, %p3354_p12 }
  0x7e   : > { %3364 = shalt.err (!%p3361_p5)
}
  0x7f   : > { %3112 = dma.hbm_to_vmem [thread:$0]  (!%p3791_p6), %s4462_s11, 16, %s597_s18, [#allocation15]  }
  0x80   : > { %s3365_s29 = scalar_lea.hbm %s4456_s5, 16 }
  0x81   : > { %p3366_p7 = scmp.ne.s32.totalorder %s4456_s5, %s3365_s29  ;;  %p3372_p1 = scmp.lt.u32.totalorder %s3365_s29, %s4456_s5 }
  0x83   : > { %p3368_p9 = pnand %p3366_p7, %p3805_p8 }
  0x85   : > { %p3369_p4 = pneg %p3368_p9 }
  0x87   : > { %p3374_p3 = pnand %p3372_p1, %p3369_p4 }
  0x89   : > { %3377 = shalt.err (!%p3374_p3)
}
  0x8a   : > { %s3378_s30 = scalar_lea.vmem %s535_s21, 16  ;;  %s3385_s18 = scalar_lea.vmem %s535_s21, 32 }
  0x8b   : > { %p3379_p10 = scmp.ne.s32.totalorder %s535_s21, %s3378_s30  ;;  %p3386_p13 = scmp.lt.s32.totalorder %s535_s21, %s535_s21 }
  0x8c   : > { %p3387_p0 = scmp.lt.s32.totalorder %s3385_s18, %s3378_s30 }
  0x8d   : > { %p3381_p11 = pnand %p3379_p10, %p3805_p8 }
  0x8e   : > { %p3388_p2 = por %p3387_p0, %p3386_p13 }
  0x8f   : > { %p3382_p12 = pneg %p3381_p11 }
  0x91   : > { %p3389_p5 = pnand %p3388_p2, %p3382_p12 }
  0x93   : > { %3392 = shalt.err (!%p3389_p5)
}
  0x94   : > { %3097 = dma.hbm_to_vmem [thread:$0]  (!%p3791_p6), %s4456_s5, 16, %s535_s21, [#allocation6]  }
  0x95   : > { %s3630_s19 = smov [#allocation10]   ;;  %s3631_s20 = smov [#allocation13]  }
  0x96   : > { %s558_s14 = sshll.u32 %s3630_s19, 4  ;;  %s582_s29 = sshll.u32 %s3631_s20, 4  ;;  %s559_s14 = int_to_ptr.vmem [resolvable:$true] %s558_s14  ;;  %s583_s29 = int_to_ptr.vmem [resolvable:$true] %s582_s29 }
  0x97   : > { %s3393_s28 = scalar_lea.hbm %s4458_s7, 16 }
  0x98   : > { %p3394_p7 = scmp.ne.s32.totalorder %s4458_s7, %s3393_s28  ;;  %p3400_p1 = scmp.lt.u32.totalorder %s3393_s28, %s4458_s7 }
  0x9a   : > { %p3396_p9 = pnand %p3394_p7, %p3805_p8 }
  0x9c   : > { %p3397_p4 = pneg %p3396_p9 }
  0x9e   : > { %p3402_p3 = pnand %p3400_p1, %p3397_p4 }
  0xa0   : > { %3405 = shalt.err (!%p3402_p3)
}
  0xa1   : > { %s3406_s21 = scalar_lea.vmem %s559_s14, 16  ;;  %s3413_s6 = scalar_lea.vmem %s559_s14, 32 }
  0xa2   : > { %p3407_p10 = scmp.ne.s32.totalorder %s559_s14, %s3406_s21  ;;  %p3414_p13 = scmp.lt.s32.totalorder %s559_s14, %s559_s14 }
  0xa3   : > { %p3415_p0 = scmp.lt.s32.totalorder %s3413_s6, %s3406_s21 }
  0xa4   : > { %p3409_p11 = pnand %p3407_p10, %p3805_p8 }
  0xa5   : > { %p3416_p2 = por %p3415_p0, %p3414_p13 }
  0xa6   : > { %p3410_p12 = pneg %p3409_p11 }
  0xa8   : > { %p3417_p5 = pnand %p3416_p2, %p3410_p12 }
  0xaa   : > { %3420 = shalt.err (!%p3417_p5)
}
  0xab   : > { %3103 = dma.hbm_to_vmem [thread:$0]  (!%p3791_p6), %s4458_s7, 16, %s559_s14, [#allocation9]  }
  0xac   : > { %s3421_s28 = scalar_lea.hbm %s4460_s9, 16 }
  0xad   : > { %p3422_p7 = scmp.ne.s32.totalorder %s4460_s9, %s3421_s28  ;;  %p3428_p1 = scmp.lt.u32.totalorder %s3421_s28, %s4460_s9 }
  0xaf   : > { %p3424_p9 = pnand %p3422_p7, %p3805_p8 }
  0xb1   : > { %p3425_p4 = pneg %p3424_p9 }
  0xb3   : > { %p3430_p3 = pnand %p3428_p1, %p3425_p4 }
  0xb5   : > { %3433 = shalt.err (!%p3430_p3)
}
  0xb6   : > { %s3434_s21 = scalar_lea.vmem %s583_s29, 16  ;;  %s3441_s14 = scalar_lea.vmem %s583_s29, 32 }
  0xb7   : > { %p3435_p10 = scmp.ne.s32.totalorder %s583_s29, %s3434_s21  ;;  %p3442_p13 = scmp.lt.s32.totalorder %s583_s29, %s583_s29 }
  0xb8   : > { %p3443_p0 = scmp.lt.s32.totalorder %s3441_s14, %s3434_s21 }
  0xb9   : > { %p3437_p11 = pnand %p3435_p10, %p3805_p8 }
  0xba   : > { %p3444_p2 = por %p3443_p0, %p3442_p13 }
  0xbb   : > { %p3438_p12 = pneg %p3437_p11 }
  0xbd   : > { %p3445_p5 = pnand %p3444_p2, %p3438_p12 }
  0xbf   : > { %3448 = shalt.err (!%p3445_p5)
}
  0xc0   : > { %3109 = dma.hbm_to_vmem [thread:$0]  (!%p3791_p6), %s4460_s9, 16, %s583_s29, [#allocation12]  }
  0xc1   : > { %s3632_s20 = smov [#allocation16]   ;;  %s3633_s25 = smov [#allocation17]  }
  0xc2   : > { %s606_s0 = sshll.u32 %s3632_s20, 4  ;;  %s620_s28 = sshll.u32 %s3633_s25, 4  ;;  %s607_s0 = int_to_ptr.vmem [resolvable:$true] %s606_s0  ;;  %s621_s28 = int_to_ptr.vmem [resolvable:$true] %s620_s28 }
  0xc3   : > { %s3449_s18 = scalar_lea.hbm %s4463_s12, 256 }
  0xc4   : > { %p3450_p7 = scmp.ne.s32.totalorder %s4463_s12, %s3449_s18  ;;  %p3456_p1 = scmp.lt.u32.totalorder %s3449_s18, %s4463_s12 }
  0xc6   : > { %p3452_p9 = pnand %p3450_p7, %p3805_p8 }
  0xc8   : > { %p3453_p4 = pneg %p3452_p9 }
  0xca   : > { %p3458_p3 = pnand %p3456_p1, %p3453_p4 }
  0xcc   : > { %3461 = shalt.err (!%p3458_p3)
}
  0xcd   : > { %s3462_s29 = scalar_lea.vmem %s607_s0, 256  ;;  %p3470_p13 = scmp.lt.s32.totalorder %s607_s0, %s607_s0 }
  0xce   : > { %p3463_p10 = scmp.ne.s32.totalorder %s607_s0, %s3462_s29  ;;  %p3471_p0 = scmp.lt.s32.totalorder %s3462_s29, %s3462_s29 }
  0xd0   : > { %p3465_p11 = pnand %p3463_p10, %p3805_p8  ;;  %p3472_p2 = por %p3471_p0, %p3470_p13 }
  0xd2   : > { %p3466_p12 = pneg %p3465_p11 }
  0xd4   : > { %p3473_p5 = pnand %p3472_p2, %p3466_p12 }
  0xd6   : > { %3476 = shalt.err (!%p3473_p5)
}
  0xd7   : > { %3115 = dma.hbm_to_vmem [thread:$0]  (!%p3791_p6), %s4463_s12, 256, %s607_s0, [#allocation15], %s3626_s16, %s3626_s16, %s3627_s15  }
  0xd8   : > { %s3477_s30 = scalar_lea.hbm %s4464_s13, 16 }
  0xd9   : > { %p3478_p7 = scmp.ne.s32.totalorder %s4464_s13, %s3477_s30  ;;  %p3484_p1 = scmp.lt.u32.totalorder %s3477_s30, %s4464_s13 }
  0xdb   : > { %p3480_p9 = pnand %p3478_p7, %p3805_p8 }
  0xdd   : > { %p3481_p4 = pneg %p3480_p9 }
  0xdf   : > { %p3486_p3 = pnand %p3484_p1, %p3481_p4 }
  0xe1   : > { %3489 = shalt.err (!%p3486_p3)
}
  0xe2   : > { %s3490_s6 = scalar_lea.vmem %s621_s28, 16  ;;  %s3497_s16 = scalar_lea.vmem %s621_s28, 32 }
  0xe3   : > { %p3491_p10 = scmp.ne.s32.totalorder %s621_s28, %s3490_s6  ;;  %p3498_p13 = scmp.lt.s32.totalorder %s621_s28, %s621_s28 }
  0xe4   : > { %p3499_p0 = scmp.lt.s32.totalorder %s3497_s16, %s3490_s6 }
  0xe5   : > { %p3493_p11 = pnand %p3491_p10, %p3805_p8 }
  0xe6   : > { %p3500_p2 = por %p3499_p0, %p3498_p13 }
  0xe7   : > { %p3494_p12 = pneg %p3493_p11 }
  0xe9   : > { %p3501_p5 = pnand %p3500_p2, %p3494_p12 }
  0xeb   : > { %3504 = shalt.err (!%p3501_p5)
}
  0xec   : > { %3118 = dma.hbm_to_vmem [thread:$0]  (!%p3791_p6), %s4464_s13, 16, %s621_s28, [#allocation18]  }
  0xed   : > { %s2719_s27 = sadd.s32 4294967294, %s3621_s24   ;;  %s3986_s4 = sadd.s32 1, %s3621_s24  }
  0xee   : > { %s100_s29 = sadd.s32 1, %s3617_s23  ;;  %s97_s19 = ssub.s32 %s3621_s24, %s3986_s4 }
  0xef   : > { %p107_p8 = scmp.ne.s32.totalorder %s3617_s23, %s3613_s22  ;;  %p98_p7 = scmp.eq.s32.totalorder %s97_s19, 0 }
  0xf0   : > { %p108_p9 = scmp.eq.s32.totalorder %s3621_s24, 0  ;;  %p113_p4 = scmp.ne.s32.totalorder %s3613_s22, %s3609_s1 }
  0xf1   : > { %p494_p1 = scmp.eq.s32.totalorder %s3775_s3, 1  ;;  %p4510_p10 = scmp.eq.s32.totalorder %s3775_s3, 0 }
  0xf2   : > { %s3998_s20 = scalar_select %p98_p7, %s3617_s23, %s100_s29  }
  0xf3   : > { %p109_p3 = por %p108_p9, %p107_p8  ;;  %p4002_p11 = por %p4510_p10, %p113_p4 }
  0xf4   : > { %p4006_p6 = por %p494_p1, %p107_p8  ;;  %p500_p12 = scmp.eq.s32.totalorder %s2719_s27, 1 }
  0xf5   : > { %p3136_p13 = scmp.lt.s32.totalorder %s3621_s24, 2  ;;  %s663_s2 = sand.u32 1, %s3617_s23  }
  0xf6   : > { %s4512_s28 = scalar_select %p4006_p6, 1, 0 }
  0xf7   : > { %p4012_p0 = por %p500_p12, %p113_p4  ;;  %s2731_s18 = sshll.u32 %s3621_s24, 4 }
  0xf8   : > { %s4514_s14 = sld [smem:[#allocation29_spill]]  ;;  %s666_s16 = scalar_lea.vmem [#allocation2], %s663_s2 }
  0xf9   : > { %s4513_s30 = scalar_select %p4012_p0, 1, 0 }
  0xfa   : > { %s673_s15 = sshll.u32 %s666_s16, 4  ;;  %p4024_p2 = pnand %p3136_p13, %p109_p3  ;;  %s4022_s15 = int_to_ptr.vmem [resolvable:$true] %s673_s15 }
  0xfb   : > { %s664_s27 = scalar_lea.sflag [#allocation3], %s663_s2 }
  0xfc   : > { %p3507_p8 = pneg %p4024_p2 }
  0xfe   : > { %s4020_s6 = scalar_lea.hbm %s4514_s14, %s2731_s18  ;;  %s3510_s17 = scalar_lea.hbm %s4514_s14, 32 }
  0xff   : > { %s3505_s29 = scalar_lea.hbm %s4020_s6, 16  ;;  %p3511_p4 = scmp.lt.u32.totalorder %s4020_s6, %s4514_s14 }
 0x100   : > { %p3506_p5 = scmp.ne.s32.totalorder %s4020_s6, %s3505_s29  ;;  %p3512_p1 = scmp.lt.u32.totalorder %s3510_s17, %s3505_s29 }
 0x101   : > { %p3514_p10 = scmp.lt.u32.totalorder %s3505_s29, %s4020_s6 }
 0x102   : > { %p3508_p7 = pnand %p3507_p8, %p3506_p5  ;;  %p3513_p3 = por %p3512_p1, %p3511_p4 }
 0x104   : > { %p3509_p9 = pneg %p3508_p7  ;;  %p3515_p12 = por %p3514_p10, %p3513_p3 }
 0x106   : > { %p3516_p13 = pnand %p3515_p12, %p3509_p9 }
 0x108   : > { %3519 = shalt.err (!%p3516_p13)
}
 0x109   : > { %s3520_s2 = scalar_lea.vmem %s4022_s15, 16  ;;  %s3634_s19 = smov [#allocation2]  }
 0x10a   : > { %p3521_p5 = scmp.ne.s32.totalorder %s4022_s15, %s3520_s2  ;;  %s3525_s18 = sshll.u32 %s3634_s19, 4  ;;  %s3526_s18 = int_to_ptr.vmem [resolvable:$false] %s3525_s18 }
 0x10b   : > { %s3527_s21 = scalar_lea.vmem %s3526_s18, 32  ;;  %p3528_p6 = scmp.lt.s32.totalorder %s4022_s15, %s3526_s18 }
 0x10c   : > { %p3523_p7 = pnand %p3521_p5, %p3507_p8  ;;  %p3529_p4 = scmp.lt.s32.totalorder %s3527_s21, %s3520_s2 }
 0x10e   : > { %p3524_p0 = pneg %p3523_p7  ;;  %p3530_p1 = por %p3529_p4, %p3528_p6 }
 0x110   : > { %p3531_p3 = pnand %p3530_p1, %p3524_p0 }
 0x112   : > { %3534 = shalt.err (!%p3531_p3)
}
 0x113   : > { %3122 = dma.hbm_to_vmem [thread:$0]  (!%p4024_p2), %s4020_s6, 16, %s4022_s15, %s664_s27  }
 0x114   : > { %p4516_p9 = scmp.ne.s32.totalorder %s4505_s26, 0 }
 0x115   : > { %s4056_s29 = sand.u32 (!%p4516_p9), 1, %s3613_s22  }
 0x116   : > { %682 = sbr.rel (%p4516_p9) target bundleno = 5962 (0x174a), region = 100  ;;  %s685_s17 = scalar_lea.sflag (!%p4516_p9), [#allocation3], %s4056_s29 }
 0x11d   : > { %3580 = dma.done.wait (%p4002_p11), %s685_s17, 16  }
 0x11e   : > { %3582 = vsyncadd (%p4002_p11), %s685_s17, 4294967280  ;;  %p4517_p6 = scmp.eq.s32.totalorder %s3775_s3, 0 }
 0x120   : > { %3584 = dma.done.wait (%p4517_p6), [#allocation6], 144   ;;  %p4518_p0 = pmov %p4517_p6 }
 0x122   : > { %3586 = vsyncadd (%p4518_p0), [#allocation6], 4294967152  ;;  %p4519_p2 = pmov %p4518_p0 }
 0x123   : > { %p4520_p8 = pmov %p4518_p0 }
 0x124   : > { %3588 = dma.done.wait (%p4519_p2), [#allocation9], 272  }
 0x125   : > { %3590 = vsyncadd (%p4520_p8), [#allocation9], 4294967024  ;;  %p4521_p10 = pmov %p4518_p0 }
 0x126   : > { %p4522_p12 = pmov %p4518_p0 }
 0x127   : > { %3592 = dma.done.wait (%p4521_p10), [#allocation12], 272  }
 0x128   : > { %3594 = vsyncadd (%p4522_p12), [#allocation12], 4294967024  ;;  %p4523_p11 = pmov %p4518_p0 }
 0x129   : > { %p4524_p13 = pmov %p4518_p0 }
 0x12a   : > { %3596 = dma.done.wait (%p4523_p11), [#allocation15], 272  }
 0x12b   : > { %3598 = vsyncadd (%p4524_p13), [#allocation15], 4294967024  ;;  %p4525_p5 = pmov %p4518_p0 }
 0x12c   : > { %p4526_p7 = pmov %p4518_p0 }
 0x12d   : > { %3600 = dma.done.wait (%p4525_p5), [#allocation18], 16  }
 0x12e   : > { %3602 = vsyncadd (%p4526_p7), [#allocation18], 4294967280  ;;  %p787_p4 = scmp.lt.s32.totalorder %s3775_s3, 1  ;;  %v3635_v0 = vmov 0.0   ;;  %vm3636_vm0 = vmmov 0   ;;  %s4527_s0 = sld [smem:[#allocation27_spill]] }
 0x12f   : > { %2863 = vmatprep.subr.bf16.mxu1 %v3635_v0  ;;  %2867 = vmatprep.mubr.msk.bf16.mxu1 %vm3636_vm0, %v3635_v0  ;;  %s4528_s18 = sld [smem:[#allocation31_spill]]  ;;  %vm826_vm1 = vcmask 261120   ;;  %v2745_v5 = vld [vmem:[#allocation7] ss:$0 sm:$0xff]  ;;  %s3637_s6 = smov 120   ;;  %vm875_vm2 = vcmask 64512  }
 0x130   : > { %s4089_s26 = scalar_select %p787_p4, %s3775_s3, 1  ;;  %2877 = vmatprep.subr.bf16.mxu0 %v3635_v0  ;;  %2879 = vmatprep.mubr.msk.bf16.mxu0 %vm3636_vm0, %v3635_v0  ;;  %v4134_v17 = vld [vmem:[#allocation5] sm:$0xff]  ;;  %vm937_vm3 = vcmask 1043456   ;;  %v984_v46 = vld [vmem:[#allocation8] sm:$0xf]  ;;  %vm2459_vm4 = vcmask 523264  }
 0x131   : > { %s4489_s15 = smov 96   ;;  %s3641_s2 = smov 64   ;;  %v1148_v47 = vsel %vm937_vm3, %v984_v46, 0  ;;  %v1097_v48 = vld [vmem:[#allocation8 + $0x4] sm:$0xf] }
 0x132   : > { %s2743_s25 = sshll.u32 %s4089_s26, 3  ;;  %s4483_s19 = smov 80   ;;  %v1102_v49 = vsel %vm937_vm3, %v1097_v48, 0 }
 0x133   : > { %s4486_s21 = smov 112   ;;  %s4482_s17 = smov 72  }
 0x134   : > { %s790_s27 = scalar_lea.vmem %s4527_s0, %s2743_s25  ;;  %s4488_s0 = smov 88  }
 0x135   : > { %v3203_v1 = vld [vmem:[%s4528_s18] sm:$0xff]   ;;  %v3204_v2 = vld [vmem:[%s4528_s18 + $0x8] sm:$0xff]   ;;  %s4537_s16 = smov 80   ;;  %s4538_s26 = smov 72  }
 0x136   : > { %2864 = vmatpush3.bf16.msra.mxu1 %v3203_v1  ;;  %v4106_v3 = vld [vmem:[%s790_s27] sm:$0xff]  ;;  %s3640_s27 = smov 56   ;;  %p4544_p3 = scmp.ne.s32.totalorder %s4512_s28, 0 }
 0x137   : > { %2865 = vmatprep.subr.bf16.mxu1 %v3635_v0  ;;  %v802_v4 = vpack.c.bf16 %v4106_v3, %v4106_v3 }
 0x13a   : > { %2866 = vmatpush3.bf16.msra.mxu1 %v3204_v2 }
 0x13b   : > { %2871 = vmatprep.subr.bf16.mxu1 %v3635_v0 }
 0x13d   : > { %2868 = vmatmul.mubr.msk.bf16.vlgmr.msra.gmra.mrb[0].mxu1 %vm826_vm1, %v802_v4 }
 0x13e   : > { %2873 = vmatprep.mubr.msk.bf16.mxu1 %vm3636_vm0, %v3635_v0 }
 0x210   : > { %v864_v6 = vpop.f32.mrb[0].mxu1 }
 0x211   : > { %v865_v7 = vadd.f32 %v2745_v5, %v864_v6  ;;  %v2869_v8 = vpop.f32.mrb[1].mxu1 }
 0x212   : > { %v867_v9 = vpop.f32.mrb[2].mxu1 }
 0x213   : > { %v4115_v10 = vpack.c.bf16 %v865_v7, %v865_v7  ;;  %v2870_v11 = vpop.f32.mrb[3].mxu1 }
 0x215   : > { %985 = vrot.lane.b32.xlu1 %v4115_v10, %s3637_s6  ;;  %873 = vrot.lane.b32.xlu0 %v4115_v10, %s4489_s15  ;;  %s2795_s15 = sshll.u32 %s3775_s3, 7  ;;  %s3648_s3 = smov [#allocation19]  }
 0x219   : > { %987 = vrot.lane.b32.xlu0 %v4115_v10, %s4488_s0 }
 0x287   : > { %v874_v12 = vpop.permute.xlu0 %873  ;;  %v986_v16 = vpop.permute.xlu1 %985 }
 0x288   : > { %v880_v13 = vsel %vm875_vm2, %v874_v12, 0 }
 0x289   : > { %2872 = vmatpush3.bf16.xpose.msra.mxu1 %v880_v13 }
 0x28a   : > { %2883 = vmatprep.subr.bf16.mxu1 %v3635_v0 }
 0x28b   : > { %v988_v14 = vpop.permute.xlu0 %987 }
 0x28c   : > { %v993_v15 = vsel %vm875_vm2, %v988_v14, 0 }
 0x290   : > { %2874 = vmatmul.mubr.msk.bf16.vlgmr.msra.gmra.mrb[4].mxu1 %vm875_vm2, %v4115_v10 }
 0x291   : > { %2884 = vmatpush3.bf16.xpose.msra.mxu1 %v993_v15  ;;  %2885 = vmatprep.mubr.msk.bf16.mxu1 %vm3636_vm0, %v3635_v0 }
 0x292   : > { %2895 = vmatprep.subr.bf16.mxu1 %v3635_v0 }
 0x298   : > { %2886 = vmatmul.mubr.msk.bf16.vlgmr.msra.gmra.mrb[8].mxu1 %vm875_vm2, %v986_v16 }
 0x299   : > { %2897 = vmatprep.mubr.msk.bf16.mxu1 %vm3636_vm0, %v3635_v0  ;;  %2896 = vmatpush3.bf16.msra.mxu1 %v1102_v49 }
 0x29a   : > { %2907 = vmatprep.subr.bf16.mxu1 %v3635_v0 }
 0x363   : > { %v916_v18 = vpop.f32.mrb[4].mxu1 }
 0x364   : > { %v917_v19 = vadd.f32 %v916_v18, %v4134_v17  ;;  %v2875_v20 = vpop.f32.mrb[5].mxu1 }
 0x365   : > { %v919_v21 = vpop.f32.mrb[6].mxu1 }
 0x366   : > { %v2876_v22 = vpop.f32.mrb[7].mxu1  ;;  %v922_v23 = vsel %vm875_vm2, %v917_v19, -inf }
 0x367   : > { %923 = vmax.xlane.f32.xlu1 %v922_v23 }
 0x36b   : > { %v1029_v24 = vpop.f32.mrb[8].mxu1 }
 0x36c   : > { %v1030_v25 = vadd.f32 %v1029_v24, %v4134_v17  ;;  %v2887_v26 = vpop.f32.mrb[9].mxu1 }
 0x36d   : > { %v1032_v27 = vpop.f32.mrb[10].mxu1 }
 0x36e   : > { %v2888_v28 = vpop.f32.mrb[11].mxu1  ;;  %v1035_v29 = vsel %vm875_vm2, %v1030_v25, -inf }
 0x36f   : > { %1036 = vmax.xlane.f32.xlu0 %v1035_v29 }
 0x378   : > { %1045 = vrot.lane.b32.xlu1 %v4115_v10, %s3640_s27  ;;  %s3645_s27 = smov 48  }
 0x385   : > { %932 = vrot.lane.b32.xlu0 %v4115_v10, %s3641_s2  ;;  %s4484_s2 = smov 104  }
 0x389   : > { %1192 = vrot.lane.b32.xlu0 %v4115_v10, %s4483_s19  ;;  %s4531_s19 = sld [smem:[#allocation34_spill]] }
 0x38d   : > { %1190 = vrot.lane.b32.xlu0 %v4115_v10, %s4486_s21  ;;  %s4529_s21 = sld [smem:[#allocation28_spill]] }
 0x393   : > { %s794_s0 = scalar_lea.vmem %s4529_s21, %s2743_s25  ;;  %s4530_s25 = sld [smem:[#allocation33_spill]] }
 0x394   : > { %s4532_s21 = scalar_lea.vmem [#allocation2], %s4056_s29 }
 0x3f4   : > { %v924_v30 = vpop.xlane.xlu1 %923 }
 0x3f5   : > { %v925_v31 = vsub.f32 %v917_v19, %v924_v30 }
 0x3f7   : > { %v926_v32 = vmul.f32 1.442695, %v925_v31 }
 0x3f8   : > { %v1046_v39 = vpop.permute.xlu1 %1045 }
 0x3f9   : > { %3215 = vpow2.f32 %v926_v32  ;;  %v1051_v42 = vsel %vm937_vm3, %v1046_v39, 0 }
 0x3fc   : > { %v1037_v33 = vpop.xlane.xlu0 %1036 }
 0x3fd   : > { %v1038_v34 = vsub.f32 %v1030_v25, %v1037_v33 }
 0x3ff   : > { %v1039_v35 = vmul.f32 1.442695, %v1038_v34 }
 0x400   : > { %v933_v36 = vpop.permute.xlu0 %932 }
 0x401   : > { %3217 = vpow2.f32 %v1039_v35  ;;  %v939_v37 = vsel %vm937_vm3, %v933_v36, 0  ;;  %v1302_v35 = vld [vmem:[#allocation8 + $0x8] sm:$0xf] }
 0x402   : > { %2878 = vmatpush3.bf16.msra.mxu0 %v939_v37  ;;  %v1307_v36 = vsel %vm937_vm3, %v1302_v35, 0 }
 0x403   : > { %v3216_v38 = vpop.eup %3215  ;;  %2889 = vmatprep.subr.bf16.mxu0 %v3635_v0 }
 0x404   : > { %v928_v40 = vsel %vm875_vm2, %v3216_v38, 0.0  ;;  %v931_v41 = vpack.c.bf16 %v3216_v38, %v3216_v38  ;;  %v1193_v50 = vpop.permute.xlu0 %1192 }
 0x405   : > { %929 = vadd.xlane.f32.xlu0 %v928_v40  ;;  %v1198_v6 = vsel %vm875_vm2, %v1193_v50, 0 }
 0x406   : > { %2880 = vmatmul.mubr.msk.bf16.vlgmr.msra.gmra.mrb[0].mxu0 %vm875_vm2, %v931_v41 }
 0x407   : > { %2890 = vmatpush3.bf16.msra.mxu0 %v1051_v42  ;;  %2891 = vmatprep.mubr.msk.bf16.mxu0 %vm3636_vm0, %v3635_v0 }
 0x408   : > { %2901 = vmatprep.subr.bf16.mxu0 %v3635_v0  ;;  %v1191_v51 = vpop.permute.xlu0 %1190 }
 0x40b   : > { %v3218_v43 = vpop.eup %3217 }
 0x40c   : > { %v1041_v44 = vsel %vm875_vm2, %v3218_v43, 0.0  ;;  %v1044_v45 = vpack.c.bf16 %v3218_v43, %v3218_v43 }
 0x40d   : > { %1042 = vadd.xlane.f32.xlu1 %v1041_v44 }
 0x40e   : > { %2892 = vmatmul.mubr.msk.bf16.vlgmr.msra.gmra.mrb[4].mxu0 %vm875_vm2, %v1044_v45 }
 0x40f   : > { %2903 = vmatprep.mubr.msk.bf16.mxu0 %vm3636_vm0, %v3635_v0  ;;  %2902 = vmatpush3.bf16.msra.mxu0 %v1148_v47 }
 0x410   : > { %2913 = vmatprep.subr.bf16.mxu0 %v3635_v0 }
 0x41b   : > { %1352 = vrot.lane.b32.xlu0 %v4115_v10, %s4482_s17  ;;  %s4534_s17 = smov 88  }
 0x492   : > { %v930_v52 = vpop.xlane.xlu0 %929 }
 0x493   : > { %3219 = vrcp.f32 %v930_v52 }
 0x496   : > { %v1353_v30 = vpop.permute.xlu0 %1352 }
 0x497   : > { %v1358_v33 = vsel %vm875_vm2, %v1353_v30, 0  ;;  %v3208_v30 = vld [vmem:[#allocation11 + $0x8] sm:$0xff]  }
 0x49a   : > { %v1043_v53 = vpop.xlane.xlu1 %1042 }
 0x49b   : > { %3221 = vrcp.f32 %v1043_v53 }
 0x49d   : > { %v3220_v54 = vpop.eup %3219 }
 0x4a5   : > { %v3222_v61 = vpop.eup %3221 }
 0x4d9   : > { %v975_v55 = vpop.f32.mrb[0].mxu0 }
 0x4da   : > { %v982_v56 = vmul.f32 %v3220_v54, %v975_v55  ;;  %v2881_v57 = vpop.f32.mrb[1].mxu0 }
 0x4db   : > { %v978_v58 = vpop.f32.mrb[2].mxu0 }
 0x4dc   : > { %v983_v59 = vpack.c.bf16 %v982_v56, %v982_v56  ;;  %v2882_v60 = vpop.f32.mrb[3].mxu0 }
 0x4de   : > { %2904 = vmatmul.mubr.msk.bf16.vlgmr.msra.gmra.mrb[8].mxu0 %vm875_vm2, %v983_v59 }
 0x4df   : > { %2915 = vmatprep.mubr.msk.bf16.mxu0 %vm3636_vm0, %v3635_v0 }
 0x4e1   : > { %v1087_v62 = vpop.f32.mrb[4].mxu0 }
 0x4e2   : > { %v1094_v63 = vmul.f32 %v3222_v61, %v1087_v62  ;;  %v2893_v1 = vpop.f32.mrb[5].mxu0 }
 0x4e3   : > { %v1090_v2 = vpop.f32.mrb[6].mxu0 }
 0x4e4   : > { %v1095_v4 = vpack.c.bf16 %v1094_v63, %v1094_v63  ;;  %v2894_v5 = vpop.f32.mrb[7].mxu0 }
 0x4e6   : > { %2898 = vmatmul.mubr.msk.bf16.vlgmr.msra.gmra.mrb[12].mxu1 %vm875_vm2, %v1095_v4 }
 0x4e7   : > { %2908 = vmatpush3.bf16.xpose.msra.mxu1 %v1198_v6  ;;  %2909 = vmatprep.mubr.msk.bf16.mxu1 %vm3636_vm0, %v3635_v0 }
 0x4e8   : > { %2919 = vmatprep.subr.bf16.mxu1 %v3635_v0 }
 0x4ee   : > { %2910 = vmatmul.mubr.msk.bf16.vlgmr.msra.gmra.mrb[16].mxu1 %vm875_vm2, %v1191_v51 }
 0x4ef   : > { %2921 = vmatprep.mubr.msk.bf16.mxu1 %vm3636_vm0, %v3635_v0  ;;  %2920 = vmatpush3.bf16.msra.mxu1 %v1307_v36 }
 0x4f0   : > { %2931 = vmatprep.subr.bf16.mxu1 %v3635_v0 }
 0x5b1   : > { %v1184_v7 = vpop.f32.mrb[8].mxu0 }
 0x5b2   : > { %v2905_v8 = vpop.f32.mrb[9].mxu0 }
 0x5b3   : > { %v1187_v9 = vpop.f32.mrb[10].mxu0 }
 0x5b4   : > { %v2906_v11 = vpop.f32.mrb[11].mxu0 }
 0x5b5   : > { %v2761_v11 = vld [vmem:[#allocation10] ss:$0 sm:$0xff] }
 0x5b9   : > { %v1138_v12 = vpop.f32.mrb[12].mxu1 }
 0x5ba   : > { %v4175_v13 = vadd.f32 %v1184_v7, %v1138_v12  ;;  %v2899_v14 = vpop.f32.mrb[13].mxu1 }
 0x5bb   : > { %v1141_v15 = vpop.f32.mrb[14].mxu1 }
 0x5bc   : > { %v2900_v16 = vpop.f32.mrb[15].mxu1 }
 0x5c1   : > { %v1234_v18 = vpop.f32.mrb[16].mxu1 }
 0x5c2   : > { %v1235_v19 = vadd.f32 %v1234_v18, %v4134_v17  ;;  %v2911_v20 = vpop.f32.mrb[17].mxu1 }
 0x5c3   : > { %v1237_v21 = vpop.f32.mrb[18].mxu1 }
 0x5c4   : > { %v2912_v22 = vpop.f32.mrb[19].mxu1  ;;  %v1240_v23 = vsel %vm875_vm2, %v1235_v19, -inf }
 0x5c5   : > { %1241 = vmax.xlane.f32.xlu1 %v1240_v23 }
 0x5d6   : > { %1250 = vrot.lane.b32.xlu1 %v4115_v10, %s3645_s27  ;;  %s3647_s27 = smov 40  }
 0x5da   : > { %1350 = vrot.lane.b32.xlu1 %v4115_v10, %s4484_s2  ;;  %s4535_s2 = smov 112  }
 0x652   : > { %v1242_v24 = vpop.xlane.xlu1 %1241 }
 0x653   : > { %v1243_v25 = vsub.f32 %v1235_v19, %v1242_v24 }
 0x655   : > { %v1244_v26 = vmul.f32 1.442695, %v1243_v25 }
 0x656   : > { %v1251_v27 = vpop.permute.xlu1 %1250 }
 0x657   : > { %3223 = vpow2.f32 %v1244_v26  ;;  %v1256_v28 = vsel %vm937_vm3, %v1251_v27, 0  ;;  %v3205_v26 = vld [vmem:[%s4461_s10] sm:$0xff]  }
 0x658   : > { %2914 = vmatpush3.bf16.msra.mxu0 %v1256_v28  ;;  %v797_v27 = vld [vmem:[%s794_s0] sm:$0xff]  ;;  %s4539_s0 = sld [smem:[#allocation35_spill]] }
 0x659   : > { %2925 = vmatprep.subr.bf16.mxu0 %v3635_v0  ;;  %v1609_v28 = vpack.c.bf16 %v797_v27, %v797_v27  ;;  %v1793_v27 = vld [vmem:[#allocation16] sm:$0xf] }
 0x65a   : > { %v1351_v34 = vpop.permute.xlu1 %1350 }
 0x661   : > { %v3224_v29 = vpop.eup %3223 }
 0x662   : > { %v1246_v31 = vsel %vm875_vm2, %v3224_v29, 0.0  ;;  %v1249_v32 = vpack.c.bf16 %v3224_v29, %v3224_v29  ;;  %v3207_v29 = vld [vmem:[#allocation11] sm:$0xff]  }
 0x663   : > { %1247 = vadd.xlane.f32.xlu1 %v1246_v31 }
 0x664   : > { %2916 = vmatmul.mubr.msk.bf16.vlgmr.msra.gmra.mrb[12].mxu0 %vm875_vm2, %v1249_v32 }
 0x665   : > { %2926 = vmatpush3.bf16.xpose.msra.mxu0 %v1358_v33  ;;  %2927 = vmatprep.mubr.msk.bf16.mxu0 %vm3636_vm0, %v3635_v0  ;;  %v1532_v33 = vlaneseq }
 0x666   : > { %2937 = vmatprep.subr.bf16.mxu0 %v3635_v0 }
 0x667   : > { %v4234_v35 = vshrl.u32 %v1532_v33, 7 }
 0x669   : > { %v1534_v36 = vsub.s32 0, %v4234_v35 }
 0x66c   : > { %2928 = vmatmul.mubr.msk.bf16.vlgmr.msra.gmra.mrb[16].mxu0 %vm875_vm2, %v1351_v34 }
 0x66d   : > { %2939 = vmatprep.mubr.msk.bf16.mxu0 %vm3636_vm0, %v3635_v0 }
 0x6f0   : > { %v1248_v37 = vpop.xlane.xlu1 %1247 }
 0x6f1   : > { %3225 = vrcp.f32 %v1248_v37  ;;  %v4240_v37 = vld [vmem:[%s4530_s25] sm:$0x7]  ;;  %s2742_s25 = sshll.u32 %s4056_s29, 3 }
 0x6fb   : > { %v3226_v38 = vpop.eup %3225 }
 0x737   : > { %v1292_v39 = vpop.f32.mrb[12].mxu0 }
 0x738   : > { %v1299_v40 = vmul.f32 %v3226_v38, %v1292_v39  ;;  %v2917_v41 = vpop.f32.mrb[13].mxu0  ;;  %v4245_v38 = vld [vmem:[%s4531_s19] sm:$0x7]  ;;  %v1535_v39 = vrot.slane %v4240_v37, %v1534_v36  ;;  %s786_s19 = scalar_lea.vmem [#allocation19], %s2742_s25  ;;  %s3539_s25 = sshll.u32 %s3648_s3, 4  ;;  %s3540_s25 = int_to_ptr.vmem [resolvable:$false] %s3539_s25 }
 0x739   : > { %v1295_v42 = vpop.f32.mrb[14].mxu0 }
 0x73a   : > { %v1300_v43 = vpack.c.bf16 %v1299_v40, %v1299_v40  ;;  %v2918_v44 = vpop.f32.mrb[15].mxu0  ;;  %v1540_v42 = vrot.slane %v4245_v38, %v1534_v36 }
 0x73c   : > { %2922 = vmatmul.mubr.msk.bf16.vlgmr.msra.gmra.mrb[20].mxu1 %vm875_vm2, %v1300_v43 }
 0x73d   : > { %2933 = vmatprep.mubr.msk.bf16.mxu1 %vm3636_vm0, %v3635_v0 }
 0x73f   : > { %v1394_v45 = vpop.f32.mrb[16].mxu0 }
 0x740   : > { %v1395_v46 = vadd.f32 %v1394_v45, %v4134_v17  ;;  %v2929_v47 = vpop.f32.mrb[17].mxu0 }
 0x741   : > { %v1397_v48 = vpop.f32.mrb[18].mxu0 }
 0x742   : > { %v2930_v49 = vpop.f32.mrb[19].mxu0  ;;  %v1400_v50 = vsel %vm875_vm2, %v1395_v46, -inf }
 0x743   : > { %1401 = vmax.xlane.f32.xlu0 %v1400_v50 }
 0x759   : > { %1410 = vrot.lane.b32.xlu0 %v4115_v10, %s3647_s27  ;;  %v1462_v10 = vld [vmem:[#allocation8 + $0xc] sm:$0xf]  ;;  %s4536_s27 = smov 104  }
 0x75a   : > { %v1467_v58 = vsel %vm937_vm3, %v1462_v10, 0 }
 0x75b   : > { %2938 = vmatpush3.bf16.msra.mxu0 %v1467_v58 }
 0x75c   : > { %2951 = vmatprep.subr.bf16.mxu0 %v3635_v0 }
 0x7d0   : > { %v1402_v51 = vpop.xlane.xlu0 %1401 }
 0x7d1   : > { %v1403_v52 = vsub.f32 %v1395_v46, %v1402_v51  ;;  %v2766_v46 = vld [vmem:[#allocation14] ss:$0 sm:$0xff] }
 0x7d3   : > { %v1404_v53 = vmul.f32 1.442695, %v1403_v52 }
 0x7d4   : > { %v1411_v54 = vpop.permute.xlu0 %1410 }
 0x7d5   : > { %3227 = vpow2.f32 %v1404_v53  ;;  %v1416_v55 = vsel %vm937_vm3, %v1411_v54, 0  ;;  %v2762_v54 = vld [vmem:[#allocation13] ss:$0 sm:$0xff] }
 0x7d6   : > { %2932 = vmatpush3.bf16.msra.mxu1 %v1416_v55 }
 0x7d7   : > { %2943 = vmatprep.subr.bf16.mxu1 %v3635_v0 }
 0x7df   : > { %v3228_v17 = vpop.eup %3227 }
 0x7e0   : > { %v1406_v56 = vsel %vm875_vm2, %v3228_v17, 0.0  ;;  %v1409_v57 = vpack.c.bf16 %v3228_v17, %v3228_v17 }
 0x7e1   : > { %1407 = vadd.xlane.f32.xlu1 %v1406_v56 }
 0x7e2   : > { %2934 = vmatmul.mubr.msk.bf16.vlgmr.msra.gmra.mrb[24].mxu1 %vm875_vm2, %v1409_v57 }
 0x7e3   : > { %2947 = vmatprep.mubr.msk.bf16.mxu1 %vm3636_vm0, %v3635_v0  ;;  %2944 = vmatpush3.bf16.msra.mxu1 %v3207_v29 }
 0x7e4   : > { %2945 = vmatprep.subr.bf16.mxu1 %v3635_v0 }
 0x7e7   : > { %2946 = vmatpush3.bf16.msra.mxu1 %v3208_v30 }
 0x7e8   : > { %2959 = vmatprep.subr.bf16.mxu1 %v3635_v0 }
 0x80f   : > { %v1343_v59 = vpop.f32.mrb[20].mxu1 }
 0x810   : > { %v1349_v60 = vadd.f32 %v1343_v59, %v4175_v13  ;;  %v2923_v61 = vpop.f32.mrb[21].mxu1 }
 0x811   : > { %v1346_v62 = vpop.f32.mrb[22].mxu1 }
 0x812   : > { %v2924_v63 = vpop.f32.mrb[23].mxu1  ;;  %v4278_v62 = vld [vmem:[%s4532_s21] ss:$0 sm:$0xff]  ;;  %s2542_s21 = sshll.u32 %s786_s19, 4  ;;  %s4408_s21 = int_to_ptr.vmem [resolvable:$true] %s2542_s21 }
 0x813   : > { %p3542_p0 = scmp.lt.s32.totalorder %s4408_s21, %s3540_s25 }
 0x86e   : > { %v1408_v1 = vpop.xlane.xlu1 %1407 }
 0x86f   : > { %3229 = vrcp.f32 %v1408_v1 }
 0x879   : > { %v3230_v2 = vpop.eup %3229 }
 0x8b5   : > { %v1452_v4 = vpop.f32.mrb[24].mxu1 }
 0x8b6   : > { %v1459_v5 = vmul.f32 %v3230_v2, %v1452_v4  ;;  %v2935_v6 = vpop.f32.mrb[25].mxu1 }
 0x8b7   : > { %v1455_v7 = vpop.f32.mrb[26].mxu1 }
 0x8b8   : > { %v1460_v8 = vpack.c.bf16 %v1459_v5, %v1459_v5  ;;  %v2936_v9 = vpop.f32.mrb[27].mxu1 }
 0x8ba   : > { %2940 = vmatmul.mubr.msk.bf16.vlgmr.msra.gmra.mrb[20].mxu0 %vm875_vm2, %v1460_v8 }
 0x8bb   : > { %2955 = vmatprep.mubr.msk.bf16.mxu0 %vm3636_vm0, %v3635_v0  ;;  %2952 = vmatpush3.bf16.msra.mxu0 %v3205_v26 }
 0x8bc   : > { %2953 = vmatprep.subr.bf16.mxu0 %v3635_v0 }
 0x98d   : > { %v1503_v12 = vpop.f32.mrb[20].mxu0 }
 0x98e   : > { %v1509_v13 = vadd.f32 %v1503_v12, %v1349_v60  ;;  %v2941_v14 = vpop.f32.mrb[21].mxu0 }
 0x98f   : > { %v1506_v15 = vpop.f32.mrb[22].mxu0 }
 0x990   : > { %v1516_v16 = vadd.f32 %v2761_v11, %v1509_v13  ;;  %v2942_v18 = vpop.f32.mrb[23].mxu0 }
 0x992   : > { %v1517_v19 = vadd.f32 %v1516_v16, %v4106_v3  ;;  %v3206_v3 = vld [vmem:[%s4461_s10 + $0x8] sm:$0xff]  }
 0x993   : > { %2954 = vmatpush3.bf16.msra.mxu0 %v3206_v3 }
 0x994   : > { %v1518_v20 = vsel %vm826_vm1, %v1517_v19, 0.0  ;;  %2965 = vmatprep.subr.bf16.mxu0 %v3635_v0 }
 0x995   : > { %1519 = vadd.xlane.f32.xlu1 %v1518_v20 }
 0x996   : > { %2956 = vmatmul.mubr.msk.bf16.vlgmr.msra.gmra.mrb[24].mxu0 %vm826_vm1, %v1609_v28 }
 0x997   : > { %2967 = vmatprep.mubr.msk.bf16.mxu0 %vm3636_vm0, %v3635_v0 }
 0xa22   : > { %v1520_v21 = vpop.xlane.xlu1 %1519 }
 0xa23   : > { %v1522_v22 = vmul.f32 0.03125, %v1520_v21 }
 0xa25   : > { %v1523_v23 = vsub.f32 %v1517_v19, %v1522_v22 }
 0xa27   : > { %v1524_v24 = vmul.f32 %v1523_v23, %v1523_v23 }
 0xa29   : > { %v1525_v25 = vsel %vm826_vm1, %v1524_v24, 0.0 }
 0xa2a   : > { %1526 = vadd.xlane.f32.xlu1 %v1525_v25 }
 0xa69   : > { %v1670_v47 = vpop.f32.mrb[24].mxu0 }
 0xa6a   : > { %v1671_v48 = vadd.f32 %v2766_v46, %v1670_v47  ;;  %v2957_v49 = vpop.f32.mrb[25].mxu0 }
 0xa6b   : > { %v1673_v50 = vpop.f32.mrb[26].mxu0 }
 0xa6c   : > { %v4256_v51 = vpack.c.bf16 %v1671_v48, %v1671_v48  ;;  %v2958_v52 = vpop.f32.mrb[27].mxu0 }
 0xa6e   : > { %1797 = vrot.lane.b32.xlu1 %v4256_v51, %s3637_s6  ;;  %v1689_v53 = vsel %vm875_vm2, %v4256_v51, 0 }
 0xab7   : > { %v1527_v31 = vpop.xlane.xlu1 %1526 }
 0xab8   : > { %v1528_v32 = vmul.f32 0.03125, %v1527_v31  ;;  %v1958_v31 = vsel %vm937_vm3, %v1793_v27, 0 }
 0xaba   : > { %v1529_v34 = vadd.f32 1e-05, %v1528_v32  ;;  %v1907_v32 = vld [vmem:[#allocation16 + $0x4] sm:$0xf] }
 0xabb   : > { %v1912_v33 = vsel %vm937_vm3, %v1907_v32, 0 }
 0xabc   : > { %3231 = vrsqrt.f32 %v1529_v34 }
 0xac6   : > { %v3232_v40 = vpop.eup %3231 }
 0xac7   : > { %v1531_v41 = vmul.f32 %v3232_v40, %v1523_v23 }
 0xac9   : > { %v1536_v43 = vmul.f32 %v1535_v39, %v1531_v41 }
 0xacb   : > { %v4249_v44 = vadd.f32 %v1540_v42, %v1536_v43 }
 0xacd   : > { %v1542_v45 = vpack.c.bf16 %v4249_v44, %v4249_v44 }
 0xacf   : > { %2948 = vmatmul.mubr.msk.bf16.vlgmr.msra.gmra.mrb[28].mxu1 %vm826_vm1, %v1542_v45 }
 0xad0   : > { %2961 = vmatprep.mubr.msk.bf16.mxu1 %vm3636_vm0, %v3635_v0  ;;  %2960 = vmatpush3.bf16.xpose.msra.mxu1 %v1689_v53 }
 0xad1   : > { %2971 = vmatprep.subr.bf16.mxu1 %v3635_v0 }
 0xae0   : > { %v1798_v17 = vpop.permute.xlu1 %1797 }
 0xae1   : > { %v1803_v60 = vsel %vm875_vm2, %v1798_v17, 0 }
 0xba2   : > { %v1603_v55 = vpop.f32.mrb[28].mxu1 }
 0xba3   : > { %v1604_v56 = vadd.f32 %v2762_v54, %v1603_v55  ;;  %v2949_v57 = vpop.f32.mrb[29].mxu1 }
 0xba4   : > { %v1606_v10 = vpop.f32.mrb[30].mxu1 }
 0xba5   : > { %v4263_v58 = vpack.c.bf16 %v1604_v56, %v1604_v56  ;;  %v2950_v59 = vpop.f32.mrb[31].mxu1 }
 0xba7   : > { %1795 = vrot.lane.b32.xlu0 %v4263_v58, %s3637_s6  ;;  %2962 = vmatmul.mubr.msk.bf16.vlgmr.msra.gmra.mrb[32].mxu1 %vm875_vm2, %v4263_v58  ;;  %s4533_s6 = smov 96  }
 0xba8   : > { %2972 = vmatpush3.bf16.xpose.msra.mxu1 %v1803_v60  ;;  %2973 = vmatprep.mubr.msk.bf16.mxu1 %vm3636_vm0, %v3635_v0 }
 0xba9   : > { %2983 = vmatprep.subr.bf16.mxu1 %v3635_v0 }
 0xc19   : > { %v1796_v61 = vpop.permute.xlu0 %1795 }
 0xc1a   : > { %2974 = vmatmul.mubr.msk.bf16.vlgmr.msra.gmra.mrb[36].mxu1 %vm875_vm2, %v1796_v61 }
 0xc1b   : > { %2985 = vmatprep.mubr.msk.bf16.mxu1 %vm3636_vm0, %v3635_v0  ;;  %2984 = vmatpush3.bf16.msra.mxu1 %v1912_v33 }
 0xc1c   : > { %2995 = vmatprep.subr.bf16.mxu1 %v3635_v0 }
 0xc7a   : > { %v1725_v63 = vpop.f32.mrb[32].mxu1 }
 0xc7b   : > { %v1726_v1 = vadd.f32 %v4278_v62, %v1725_v63  ;;  %v2963_v2 = vpop.f32.mrb[33].mxu1 }
 0xc7c   : > { %v1728_v4 = vpop.f32.mrb[34].mxu1 }
 0xc7d   : > { %v2964_v5 = vpop.f32.mrb[35].mxu1  ;;  %v1731_v6 = vsel %vm875_vm2, %v1726_v1, -inf }
 0xc7e   : > { %1732 = vmax.xlane.f32.xlu0 %v1731_v6 }
 0xc94   : > { %1742 = vrot.lane.b32.xlu0 %v4256_v51, %s4533_s6 }
 0xced   : > { %v1839_v7 = vpop.f32.mrb[36].mxu1 }
 0xcee   : > { %v1840_v8 = vadd.f32 %v4278_v62, %v1839_v7  ;;  %v2975_v9 = vpop.f32.mrb[37].mxu1 }
 0xcef   : > { %v1842_v11 = vpop.f32.mrb[38].mxu1 }
 0xcf0   : > { %v2976_v12 = vpop.f32.mrb[39].mxu1  ;;  %v1845_v13 = vsel %vm875_vm2, %v1840_v8, -inf }
 0xcf1   : > { %1846 = vmax.xlane.f32.xlu1 %v1845_v13 }
 0xd02   : > { %1855 = vrot.lane.b32.xlu1 %v4256_v51, %s4534_s17  ;;  %s4541_s17 = sld [smem:[#allocation36_spill]] }
 0xd06   : > { %2002 = vrot.lane.b32.xlu1 %v4256_v51, %s4535_s2 }
 0xd0a   : > { %2000 = vrot.lane.b32.xlu1 %v4263_v58, %s4535_s2  ;;  %s4540_s2 = sld [smem:[#allocation37_spill]] }
 0xd0b   : > { %v1733_v14 = vpop.xlane.xlu0 %1732 }
 0xd0c   : > { %v1734_v15 = vsub.f32 %v1726_v1, %v1733_v14 }
 0xd0e   : > { %v1735_v16 = vmul.f32 1.442695, %v1734_v15 }
 0xd0f   : > { %v1743_v18 = vpop.permute.xlu0 %1742 }
 0xd10   : > { %3233 = vpow2.f32 %v1735_v16  ;;  %v1748_v19 = vsel %vm937_vm3, %v1743_v18, 0 }
 0xd11   : > { %2966 = vmatpush3.bf16.msra.mxu0 %v1748_v19 }
 0xd12   : > { %2977 = vmatprep.subr.bf16.mxu0 %v3635_v0 }
 0xd1a   : > { %v3234_v20 = vpop.eup %3233 }
 0xd1b   : > { %v1740_v21 = vpack.c.bf16 %v3234_v20, %v3234_v20  ;;  %v1737_v22 = vsel %vm875_vm2, %v3234_v20, 0.0 }
 0xd1d   : > { %2968 = vmatmul.mubr.msk.bf16.vlgmr.msra.gmra.mrb[28].mxu0 %vm875_vm2, %v1740_v21 }
 0xd1e   : > { %2979 = vmatprep.mubr.msk.bf16.mxu0 %vm3636_vm0, %v3635_v0 }
 0xd2e   : > { %1738 = vadd.xlane.f32.xlu1 %v1737_v22 }
 0xd3f   : > { %2162 = vrot.lane.b32.xlu1 %v4256_v51, %s4536_s27 }
 0xd7e   : > { %v1847_v23 = vpop.xlane.xlu1 %1846 }
 0xd7f   : > { %v1848_v24 = vsub.f32 %v1840_v8, %v1847_v23  ;;  %v2112_v23 = vld [vmem:[#allocation16 + $0x8] sm:$0xf] }
 0xd81   : > { %v1849_v25 = vmul.f32 1.442695, %v1848_v24  ;;  %v2117_v24 = vsel %vm937_vm3, %v2112_v23, 0  ;;  %v2343_v23 = vsub.s32 1, %v4234_v35 }
 0xd82   : > { %v1856_v26 = vpop.permute.xlu1 %1855 }
 0xd83   : > { %3235 = vpow2.f32 %v1849_v25  ;;  %v1861_v3 = vsel %vm937_vm3, %v1856_v26, 0 }
 0xd84   : > { %2978 = vmatpush3.bf16.msra.mxu0 %v1861_v3 }
 0xd85   : > { %2989 = vmatprep.subr.bf16.mxu0 %v3635_v0 }
 0xd86   : > { %v2003_v34 = vpop.permute.xlu1 %2002 }
 0xd87   : > { %v2008_v56 = vsel %vm875_vm2, %v2003_v34, 0 }
 0xd8a   : > { %v2001_v36 = vpop.permute.xlu1 %2000 }
 0xd8d   : > { %v3236_v28 = vpop.eup %3235 }
 0xd8e   : > { %v1851_v29 = vsel %vm875_vm2, %v3236_v28, 0.0  ;;  %v1854_v30 = vpack.c.bf16 %v3236_v28, %v3236_v28 }
 0xd8f   : > { %1852 = vadd.xlane.f32.xlu0 %v1851_v29 }
 0xd90   : > { %2980 = vmatmul.mubr.msk.bf16.vlgmr.msra.gmra.mrb[32].mxu0 %vm875_vm2, %v1854_v30 }
 0xd91   : > { %2990 = vmatpush3.bf16.msra.mxu0 %v1958_v31  ;;  %2991 = vmatprep.mubr.msk.bf16.mxu0 %vm3636_vm0, %v3635_v0 }
 0xd92   : > { %3001 = vmatprep.subr.bf16.mxu0 %v3635_v0 }
 0xdbb   : > { %v1739_v39 = vpop.xlane.xlu1 %1738 }
 0xdbc   : > { %3237 = vrcp.f32 %v1739_v39 }
 0xdbf   : > { %v2163_v19 = vpop.permute.xlu1 %2162 }
 0xdc0   : > { %v2168_v22 = vsel %vm875_vm2, %v2163_v19, 0  ;;  %v3210_v19 = vld [vmem:[%s4539_s0 + $0x8] sm:$0xff]  }
 0xdc6   : > { %v3238_v40 = vpop.eup %3237 }
 0xdf0   : > { %v1784_v41 = vpop.f32.mrb[28].mxu0 }
 0xdf1   : > { %v1791_v42 = vmul.f32 %v3238_v40, %v1784_v41  ;;  %v2969_v43 = vpop.f32.mrb[29].mxu0 }
 0xdf2   : > { %v1787_v45 = vpop.f32.mrb[30].mxu0 }
 0xdf3   : > { %v1792_v46 = vpack.c.bf16 %v1791_v42, %v1791_v42  ;;  %v2970_v47 = vpop.f32.mrb[31].mxu0 }
 0xdf5   : > { %2992 = vmatmul.mubr.msk.bf16.vlgmr.msra.gmra.mrb[36].mxu0 %vm875_vm2, %v1792_v46 }
 0xdf6   : > { %3003 = vmatprep.mubr.msk.bf16.mxu0 %vm3636_vm0, %v3635_v0 }
 0xe1c   : > { %v1853_v48 = vpop.xlane.xlu0 %1852 }
 0xe1d   : > { %3239 = vrcp.f32 %v1853_v48 }
 0xe27   : > { %v3240_v49 = vpop.eup %3239 }
 0xe63   : > { %v1897_v50 = vpop.f32.mrb[32].mxu0 }
 0xe64   : > { %v1904_v52 = vmul.f32 %v3240_v49, %v1897_v50  ;;  %v2981_v53 = vpop.f32.mrb[33].mxu0 }
 0xe65   : > { %v1900_v54 = vpop.f32.mrb[34].mxu0 }
 0xe66   : > { %v1905_v55 = vpack.c.bf16 %v1904_v52, %v1904_v52  ;;  %v2982_v17 = vpop.f32.mrb[35].mxu0 }
 0xe68   : > { %2986 = vmatmul.mubr.msk.bf16.vlgmr.msra.gmra.mrb[40].mxu1 %vm875_vm2, %v1905_v55 }
 0xe69   : > { %2996 = vmatpush3.bf16.xpose.msra.mxu1 %v2008_v56  ;;  %2997 = vmatprep.mubr.msk.bf16.mxu1 %vm3636_vm0, %v3635_v0 }
 0xe6a   : > { %3007 = vmatprep.subr.bf16.mxu1 %v3635_v0 }
 0xe70   : > { %2998 = vmatmul.mubr.msk.bf16.vlgmr.msra.gmra.mrb[44].mxu1 %vm875_vm2, %v2001_v36 }
 0xe71   : > { %3009 = vmatprep.mubr.msk.bf16.mxu1 %vm3636_vm0, %v3635_v0  ;;  %3008 = vmatpush3.bf16.msra.mxu1 %v2117_v24  ;;  %v2344_v24 = vrot.slane %v4240_v37, %v2343_v23 }
 0xe72   : > { %3019 = vmatprep.subr.bf16.mxu1 %v3635_v0 }
 0xec8   : > { %v1994_v57 = vpop.f32.mrb[36].mxu0 }
 0xec9   : > { %v2993_v10 = vpop.f32.mrb[37].mxu0 }
 0xeca   : > { %v1997_v59 = vpop.f32.mrb[38].mxu0 }
 0xecb   : > { %v2994_v60 = vpop.f32.mrb[39].mxu0 }
 0xf3b   : > { %v1948_v61 = vpop.f32.mrb[40].mxu1 }
 0xf3c   : > { %v4321_v63 = vadd.f32 %v1994_v57, %v1948_v61  ;;  %v2987_v1 = vpop.f32.mrb[41].mxu1 }
 0xf3d   : > { %v1951_v2 = vpop.f32.mrb[42].mxu1 }
 0xf3e   : > { %v2988_v4 = vpop.f32.mrb[43].mxu1  ;;  %v2783_v2 = vld [vmem:[#allocation17] ss:$0 sm:$0xff] }
 0xf43   : > { %v2044_v5 = vpop.f32.mrb[44].mxu1 }
 0xf44   : > { %v2045_v6 = vadd.f32 %v4278_v62, %v2044_v5  ;;  %v2999_v7 = vpop.f32.mrb[45].mxu1 }
 0xf45   : > { %v2047_v8 = vpop.f32.mrb[46].mxu1 }
 0xf46   : > { %v3000_v9 = vpop.f32.mrb[47].mxu1  ;;  %v2050_v11 = vsel %vm875_vm2, %v2045_v6, -inf }
 0xf47   : > { %2051 = vmax.xlane.f32.xlu0 %v2050_v11 }
 0xf5d   : > { %2060 = vrot.lane.b32.xlu0 %v4256_v51, %s4537_s16 }
 0xf61   : > { %2160 = vrot.lane.b32.xlu0 %v4263_v58, %s4536_s27  ;;  %s4543_s27 = sld [smem:[#allocation39_spill]] }
 0xf67   : > { %s4406_s16 = scalar_lea.hbm %s4543_s27, %s2795_s15 }
 0xfd4   : > { %v2052_v12 = vpop.xlane.xlu0 %2051 }
 0xfd5   : > { %v2053_v13 = vsub.f32 %v2045_v6, %v2052_v12 }
 0xfd7   : > { %v2054_v14 = vmul.f32 1.442695, %v2053_v13 }
 0xfd8   : > { %v2061_v15 = vpop.permute.xlu0 %2060 }
 0xfd9   : > { %3241 = vpow2.f32 %v2054_v14  ;;  %v2066_v16 = vsel %vm937_vm3, %v2061_v15, 0 }
 0xfda   : > { %3002 = vmatpush3.bf16.msra.mxu0 %v2066_v16 }
 0xfdb   : > { %3013 = vmatprep.subr.bf16.mxu0 %v3635_v0 }
 0xfdc   : > { %v2161_v58 = vpop.permute.xlu0 %2160 }
 0xfe3   : > { %v3242_v18 = vpop.eup %3241 }
 0xfe4   : > { %v2056_v20 = vsel %vm875_vm2, %v3242_v18, 0.0  ;;  %v2059_v21 = vpack.c.bf16 %v3242_v18, %v3242_v18  ;;  %v3209_v18 = vld [vmem:[%s4539_s0] sm:$0xff]   ;;  %s3535_s0 = scalar_lea.vmem %s4408_s21, 128 }
 0xfe5   : > { %2057 = vadd.xlane.f32.xlu0 %v2056_v20  ;;  %v3212_v20 = vld [vmem:[%s4540_s2 + $0x8] sm:$0xff]   ;;  %p3536_p1 = scmp.ne.s32.totalorder %s4408_s21, %s3535_s0 }
 0xfe6   : > { %3004 = vmatmul.mubr.msk.bf16.vlgmr.msra.gmra.mrb[40].mxu0 %vm875_vm2, %v2059_v21 }
 0xfe7   : > { %3014 = vmatpush3.bf16.xpose.msra.mxu0 %v2168_v22  ;;  %3015 = vmatprep.mubr.msk.bf16.mxu0 %vm3636_vm0, %v3635_v0  ;;  %p3537_p9 = pnand %p3536_p1, %p4544_p3 }
 0xfe8   : > { %3025 = vmatprep.subr.bf16.mxu0 %v3635_v0 }
 0xfe9   : > { %p3538_p6 = pneg %p3537_p9 }
 0xfee   : > { %3016 = vmatmul.mubr.msk.bf16.vlgmr.msra.gmra.mrb[44].mxu0 %vm875_vm2, %v2161_v58 }
 0xfef   : > { %3027 = vmatprep.mubr.msk.bf16.mxu0 %vm3636_vm0, %v3635_v0 }
 0xffb   : > { %2220 = vrot.lane.b32.xlu0 %v4256_v51, %s4538_s26  ;;  %s4542_s26 = sld [smem:[#allocation38_spill]] }
0x1072   : > { %v2058_v25 = vpop.xlane.xlu0 %2057 }
0x1073   : > { %3243 = vrcp.f32 %v2058_v25 }
0x1076   : > { %v2221_v29 = vpop.permute.xlu0 %2220 }
0x1077   : > { %v2226_v33 = vsel %vm937_vm3, %v2221_v29, 0 }
0x107d   : > { %v3244_v26 = vpop.eup %3243 }
0x10b9   : > { %v2102_v3 = vpop.f32.mrb[40].mxu0 }
0x10ba   : > { %v2109_v27 = vmul.f32 %v3244_v26, %v2102_v3  ;;  %v3005_v28 = vpop.f32.mrb[41].mxu0  ;;  %v2349_v3 = vrot.slane %v4245_v38, %v2343_v23 }
0x10bb   : > { %v2105_v30 = vpop.f32.mrb[42].mxu0 }
0x10bc   : > { %v2110_v31 = vpack.c.bf16 %v2109_v27, %v2109_v27  ;;  %v3006_v32 = vpop.f32.mrb[43].mxu0  ;;  %v3213_v30 = vld [vmem:[%s4540_s2 + $0x10] sm:$0xff]  }
0x10bd   : > { %v2784_v32 = vld [vmem:[%s4541_s17] ss:$0 sm:$0xff] }
0x10be   : > { %3010 = vmatmul.mubr.msk.bf16.vlgmr.msra.gmra.mrb[48].mxu1 %vm875_vm2, %v2110_v31  ;;  %v3214_v31 = vld [vmem:[%s4540_s2 + $0x18] sm:$0xff]  }
0x10bf   : > { %3020 = vmatpush3.bf16.msra.mxu1 %v2226_v33  ;;  %3021 = vmatprep.mubr.msk.bf16.mxu1 %vm3636_vm0, %v3635_v0 }
0x10c0   : > { %3031 = vmatprep.subr.bf16.mxu1 %v3635_v0 }
0x10c1   : > { %v2204_v51 = vpop.f32.mrb[44].mxu0 }
0x10c2   : > { %v2205_v34 = vadd.f32 %v4278_v62, %v2204_v51  ;;  %v3017_v36 = vpop.f32.mrb[45].mxu0  ;;  %v2272_v62 = vld [vmem:[#allocation16 + $0xc] sm:$0xf] }
0x10c3   : > { %v2207_v39 = vpop.f32.mrb[46].mxu0  ;;  %v2277_v49 = vsel %vm937_vm3, %v2272_v62, 0 }
0x10c4   : > { %v3018_v40 = vpop.f32.mrb[47].mxu0  ;;  %v2210_v41 = vsel %vm875_vm2, %v2205_v34, -inf  ;;  %3026 = vmatpush3.bf16.msra.mxu0 %v2277_v49 }
0x10c5   : > { %2211 = vmax.xlane.f32.xlu1 %v2210_v41  ;;  %3039 = vmatprep.subr.bf16.mxu0 %v3635_v0 }
0x1152   : > { %v2212_v42 = vpop.xlane.xlu1 %2211 }
0x1153   : > { %v2213_v43 = vsub.f32 %v2205_v34, %v2212_v42 }
0x1155   : > { %v2214_v45 = vmul.f32 1.442695, %v2213_v43 }
0x1157   : > { %3245 = vpow2.f32 %v2214_v45 }
0x1161   : > { %v3246_v46 = vpop.eup %3245 }
0x1162   : > { %v2216_v47 = vsel %vm875_vm2, %v3246_v46, 0.0  ;;  %v2219_v48 = vpack.c.bf16 %v3246_v46, %v3246_v46 }
0x1163   : > { %2217 = vadd.xlane.f32.xlu1 %v2216_v47 }
0x1164   : > { %3022 = vmatmul.mubr.msk.bf16.vlgmr.msra.gmra.mrb[52].mxu1 %vm875_vm2, %v2219_v48 }
0x1165   : > { %3035 = vmatprep.mubr.msk.bf16.mxu1 %vm3636_vm0, %v3635_v0  ;;  %3032 = vmatpush3.bf16.msra.mxu1 %v3209_v18 }
0x1166   : > { %3033 = vmatprep.subr.bf16.mxu1 %v3635_v0 }
0x1169   : > { %3034 = vmatpush3.bf16.msra.mxu1 %v3210_v19 }
0x1191   : > { %v2153_v50 = vpop.f32.mrb[48].mxu1 }
0x1192   : > { %v2159_v52 = vadd.f32 %v2153_v50, %v4321_v63  ;;  %v3011_v53 = vpop.f32.mrb[49].mxu1 }
0x1193   : > { %v2156_v54 = vpop.f32.mrb[50].mxu1 }
0x1194   : > { %v3012_v55 = vpop.f32.mrb[51].mxu1 }
0x11f0   : > { %v2218_v17 = vpop.xlane.xlu1 %2217 }
0x11f1   : > { %3247 = vrcp.f32 %v2218_v17 }
0x11fb   : > { %v3248_v56 = vpop.eup %3247 }
0x1237   : > { %v2262_v57 = vpop.f32.mrb[52].mxu1 }
0x1238   : > { %v2269_v10 = vmul.f32 %v3248_v56, %v2262_v57  ;;  %v3023_v59 = vpop.f32.mrb[53].mxu1  ;;  %v2519_v57 = vsub.s32 2, %v4234_v35 }
0x1239   : > { %v2265_v60 = vpop.f32.mrb[54].mxu1 }
0x123a   : > { %v2270_v61 = vpack.c.bf16 %v2269_v10, %v2269_v10  ;;  %v3024_v1 = vpop.f32.mrb[55].mxu1  ;;  %v2520_v10 = vrot.slane %v4240_v37, %v2519_v57 }
0x123c   : > { %3028 = vmatmul.mubr.msk.bf16.vlgmr.msra.gmra.mrb[48].mxu0 %vm875_vm2, %v2270_v61  ;;  %v2525_v61 = vrot.slane %v4245_v38, %v2519_v57 }
0x123d   : > { %3047 = vmatprep.mubr.msk.bf16.mxu0 %vm3636_vm0, %v3635_v0 }
0x130f   : > { %v2313_v4 = vpop.f32.mrb[48].mxu0 }
0x1310   : > { %v2319_v63 = vadd.f32 %v2313_v4, %v2159_v52  ;;  %v3029_v5 = vpop.f32.mrb[49].mxu0 }
0x1311   : > { %v2316_v6 = vpop.f32.mrb[50].mxu0 }
0x1312   : > { %v2326_v7 = vadd.f32 %v2783_v2, %v2319_v63  ;;  %v3030_v8 = vpop.f32.mrb[51].mxu0 }
0x1314   : > { %v2327_v9 = vadd.f32 %v2326_v7, %v4249_v44  ;;  %v3211_v44 = vld [vmem:[%s4540_s2] sm:$0xff]   ;;  %s3541_s2 = scalar_lea.vmem %s3540_s25, 256 }
0x1315   : > { %3040 = vmatpush3.bf16.msra.mxu0 %v3211_v44  ;;  %p3543_p2 = scmp.lt.s32.totalorder %s3541_s2, %s3535_s0 }
0x1316   : > { %v2328_v11 = vsel %vm826_vm1, %v2327_v9, 0.0  ;;  %3041 = vmatprep.subr.bf16.mxu0 %v3635_v0 }
0x1317   : > { %2329 = vadd.xlane.f32.xlu1 %v2328_v11  ;;  %p3544_p8 = por %p3543_p2, %p3542_p0 }
0x1319   : > { %3042 = vmatpush3.bf16.msra.mxu0 %v3212_v20  ;;  %p3545_p10 = pnand %p3544_p8, %p3538_p6 }
0x131a   : > { %3043 = vmatprep.subr.bf16.mxu0 %v3635_v0 }
0x131d   : > { %3044 = vmatpush3.bf16.msra.mxu0 %v3213_v30 }
0x131e   : > { %3045 = vmatprep.subr.bf16.mxu0 %v3635_v0  ;;  %v2788_v0 = vld [vmem:[%s4542_s26] ss:$0 sm:$0xff]  ;;  %s2529_s26 = scalar_lea.sflag [#allocation4], %s4056_s29 }
0x1321   : > { %3046 = vmatpush3.bf16.msra.mxu0 %v3214_v31 }
0x13a4   : > { %v2330_v12 = vpop.xlane.xlu1 %2329 }
0x13a5   : > { %v2331_v13 = vmul.f32 0.03125, %v2330_v12 }
0x13a7   : > { %v2332_v14 = vsub.f32 %v2327_v9, %v2331_v13 }
0x13a9   : > { %v2333_v15 = vmul.f32 %v2332_v14, %v2332_v14 }
0x13ab   : > { %v2334_v16 = vsel %vm826_vm1, %v2333_v15, 0.0 }
0x13ac   : > { %2335 = vadd.xlane.f32.xlu1 %v2334_v16 }
0x1439   : > { %v2336_v21 = vpop.xlane.xlu1 %2335 }
0x143a   : > { %v2337_v22 = vmul.f32 0.03125, %v2336_v21 }
0x143c   : > { %v2338_v58 = vadd.f32 1e-05, %v2337_v22 }
0x143e   : > { %3249 = vrsqrt.f32 %v2338_v58 }
0x1448   : > { %v3250_v25 = vpop.eup %3249 }
0x1449   : > { %v2340_v26 = vmul.f32 %v3250_v25, %v2332_v14 }
0x144b   : > { %v2345_v27 = vmul.f32 %v2344_v24, %v2340_v26 }
0x144d   : > { %v2350_v28 = vadd.f32 %v2349_v3, %v2345_v27 }
0x144f   : > { %v2351_v29 = vpack.c.bf16 %v2350_v28, %v2350_v28 }
0x1451   : > { %3036 = vmatmul.mubr.msk.bf16.vlgmr.msra.gmra.mrb[56].mxu1 %vm826_vm1, %v2351_v29 }
0x1524   : > { %v2412_v33 = vpop.f32.mrb[56].mxu1 }
0x1525   : > { %v2413_v51 = vadd.f32 %v2784_v32, %v2412_v33  ;;  %v3037_v34 = vpop.f32.mrb[57].mxu1 }
0x1526   : > { %v2415_v36 = vpop.f32.mrb[58].mxu1 }
0x1527   : > { %v2418_v39 = vmax.f32 %v2413_v51, 0.0  ;;  %v3038_v40 = vpop.f32.mrb[59].mxu1 }
0x1529   : > { %v2419_v41 = vpack.c.bf16 %v2418_v39, %v2418_v39 }
0x152b   : > { %3048 = vmatmul.mubr.msk.bf16.vlgmr.msra.gmra.mrb[52].mxu0 %vm2459_vm4, %v2419_v41 }
0x15fe   : > { %v2497_v42 = vpop.f32.mrb[52].mxu0 }
0x15ff   : > { %v2498_v43 = vadd.f32 %v2788_v0, %v2497_v42  ;;  %v3049_v45 = vpop.f32.mrb[53].mxu0 }
0x1600   : > { %v2500_v46 = vpop.f32.mrb[54].mxu0 }
0x1601   : > { %v3050_v47 = vpop.f32.mrb[55].mxu0  ;;  %v2503_v48 = vadd.f32 %v2498_v43, %v2350_v28 }
0x1603   : > { %v2504_v62 = vsel %vm826_vm1, %v2503_v48, 0.0 }
0x1604   : > { %2505 = vadd.xlane.f32.xlu1 %v2504_v62 }
0x1691   : > { %v2506_v49 = vpop.xlane.xlu1 %2505 }
0x1692   : > { %v2507_v50 = vmul.f32 0.03125, %v2506_v49 }
0x1694   : > { %v2508_v52 = vsub.f32 %v2503_v48, %v2507_v50 }
0x1696   : > { %v2509_v53 = vmul.f32 %v2508_v52, %v2508_v52 }
0x1698   : > { %v2510_v54 = vsel %vm826_vm1, %v2509_v53, 0.0 }
0x1699   : > { %2511 = vadd.xlane.f32.xlu0 %v2510_v54 }
0x1726   : > { %v2512_v55 = vpop.xlane.xlu0 %2511 }
0x1727   : > { %v2513_v17 = vmul.f32 0.03125, %v2512_v55 }
0x1729   : > { %v2514_v56 = vadd.f32 1e-05, %v2513_v17 }
0x172b   : > { %3251 = vrsqrt.f32 %v2514_v56 }
0x1735   : > { %v3252_v59 = vpop.eup %3251 }
0x1736   : > { %v2516_v60 = vmul.f32 %v3252_v59, %v2508_v52 }
0x1738   : > { %v2521_v1 = vmul.f32 %v2520_v10, %v2516_v60 }
0x173a   : > { %v2526_v2 = vadd.f32 %v2525_v61, %v2521_v1 }
0x173c   : > { %2527 = vst.msk [vmem:[%s786_s19] sm:$0xff] %vm826_vm1, %v2526_v2 }
0x173d   : > { %3548 = shalt.err (!%p3545_p10)
}
0x173e   : > { %s3549_s29 = scalar_lea.hbm %s4406_s16, 128  ;;  %s3553_s6 = scalar_lea.hbm %s4543_s27, 256 }
0x173f   : > { %p3550_p12 = scmp.ne.s32.totalorder %s4406_s16, %s3549_s29  ;;  %p3554_p5 = scmp.lt.u32.totalorder %s4406_s16, %s4543_s27 }
0x1740   : > { %p3555_p7 = scmp.lt.u32.totalorder %s3553_s6, %s3549_s29  ;;  %p3557_p1 = scmp.lt.u32.totalorder %s3549_s29, %s4406_s16 }
0x1741   : > { %p3551_p11 = pnand %p3550_p12, %p4544_p3 }
0x1742   : > { %p3556_p4 = por %p3555_p7, %p3554_p5 }
0x1743   : > { %p3552_p13 = pneg %p3551_p11 }
0x1744   : > { %p3558_p9 = por %p3557_p1, %p3556_p4 }
0x1746   : > { %p3559_p6 = pnand %p3558_p9, %p3552_p13 }
0x1748   : > { %3562 = shalt.err (!%p3559_p6)
}
0x1749   : > { %3089 = dma.vmem_to_hbm [thread:$0]  (%p4544_p3), %s4408_s21, 128, %s4406_s16, %s2529_s26  }
0x174a PF: > { %s2554_s0 = sand.u32 1, %s3609_s1   ;;  %p4545_p0 = scmp.ne.s32.totalorder %s4513_s30, 0 }
0x174b   : > { %p4546_p2 = scmp.ge.s32.totalorder %s3621_s24, 2  ;;  %s2555_s2 = scalar_lea.sflag [#allocation4], %s2554_s0 }
0x174d   : > { %p3124_p8 = pnand %p4546_p2, %p4545_p0 }
0x174f   : > { %3604 = dma.done.wait (!%p3124_p8), %s2555_s2, 128  }
0x1750   : > { %3606 = vsyncadd (!%p3124_p8), %s2555_s2, 4294967168  ;;  %p38_p10 = scmp.ge.s32.totalorder %s3986_s4, 4   ;;  %s4547_s1 = smov %s3613_s22 }
0x1751   : > { %s4548_s22 = smov %s3617_s23  ;;  %s4549_s23 = smov %s3998_s20 }
0x1752   : > { %s4550_s24 = smov %s3986_s4  ;;  %40 = sbr.rel (!%p38_p10) target bundleno = 24 (0x18), region = 193 }
0x1759   :  { %2560 = vsyncpa [#allocation3], 1 }
0x175a   :  { %2562 = vsyncpa [#allocation3 + $0x1], 1 }
0x175b   :  { %2563 = vsyncpa [#allocation6], 1 }
0x175c   :  { %2564 = vsyncpa [#allocation9], 1 }
0x175d   :  { %2565 = vsyncpa [#allocation12], 1 }
0x175e   :  { %2566 = vsyncpa [#allocation15], 1 }
0x175f   :  { %2567 = vsyncpa [#allocation18], 1 }
0x1760   :  { %2568 = vsyncpa [#allocation4], 1 }
0x1761   :  { %2570 = vsyncpa [#allocation4 + $0x1], 1 }

</bundles_post_ra>
